<compile_context>
chip_gen: v7x
topology: tpu7x:2x2x1
jax: 0.10.0
libtpu: 0.0.40
codegen_flags: <defaults>
</compile_context>

<pallas_src>
import functools

import jax
import jax.numpy as jnp
from jax.experimental import pallas as pl
from jax.experimental.pallas import tpu as pltpu


# --------------------------- fused Pallas kernel -----------------------------

def _fused_forward_kernel(ids_ref, emb_ref, *refs, B, T, D, H, V, num_layers):
    """Fused Embedding -> L x LSTM -> last-step -> FC forward pass.

    ids_ref : (T*B, 1) int32 (time-major token ids), VMEM
    emb_ref : (V, D)   f32 embedding table, VMEM
    layer 0 : wih0 (D, 4H), whh0 (H, 4H), bias0 (1, 4H)      (g-cols pre-scaled x2)
    layer>0 : w_fused (2H, 4H) = [W_ih ; W_hh], bias (1, 4H)  (g-cols pre-scaled x2)
    fc      : fc_w (H, O), fc_b (1, O)
    out_ref : (B, O) f32
    """
    n_w = 3 + 2 * (num_layers - 1)
    w_refs = refs[:n_w]
    fcw_ref, fcb_ref, out_ref = refs[n_w:]

    # ---- embedding gather as a one-hot matmul (lane-dense, no scalar chain) ----
    ids = ids_ref[...]                                         # (T*B, 1) int32
    iota_v = jax.lax.broadcasted_iota(jnp.int32, (T * B, V), 1)
    onehot = (iota_v == ids).astype(jnp.float32)               # (T*B, V)
    x_emb = jnp.dot(onehot, emb_ref[...],
                    preferred_element_type=jnp.float32)        # (T*B, D)

    # ---- layer 0: hoisted input projection (one MXU call for all steps) ----
    wih0 = w_refs[0][...]
    whh0 = w_refs[1][...]
    bias0 = w_refs[2][...]
    gates_x0 = jnp.dot(x_emb, wih0,
                       preferred_element_type=jnp.float32) + bias0   # (T*B, 4H)

    # Hoisted weight loads for upper layers (fused [W_ih ; W_hh]).
    upper = []
    for l in range(1, num_layers):
        wf = w_refs[3 + 2 * (l - 1)][...]                      # (2H, 4H)
        bs = w_refs[3 + 2 * (l - 1) + 1][...]                  # (1, 4H)
        upper.append((wf, bs))

    def activate(gates):
        # g-gate columns of the weights/bias were pre-scaled by 2 in the
        # wrapper, so a single full-width sigmoid covers everything:
        #   tanh(g) = 2 * sigmoid(2g) - 1.
        sg = jax.nn.sigmoid(gates)                             # one EUP pass
        i_g = sg[:, 0 * H:1 * H]
        f_g = sg[:, 1 * H:2 * H]
        g_g = 2.0 * sg[:, 2 * H:3 * H] - 1.0
        o_g = sg[:, 3 * H:4 * H]
        return i_g, f_g, g_g, o_g

    zeros = jnp.zeros((B, H), jnp.float32)
    h = [zeros] * num_layers
    c = [zeros] * num_layers

    # ---- wavefront schedule: layer l step t runs at diagonal d = l + t. ----
    # Reversed layer order inside a diagonal makes layer l read layer l-1's
    # output from the previous diagonal (step t) before it is overwritten.
    for d in range(T + num_layers - 1):
        for l in reversed(range(num_layers)):
            t = d - l
            if not (0 <= t < T):
                continue
            if l == 0:
                gates = gates_x0[t * B:(t + 1) * B, :] + jnp.dot(
                    h[0], whh0, preferred_element_type=jnp.float32)
            else:
                wf, bs = upper[l - 1]
                xh = jnp.concatenate([h[l - 1], h[l]], axis=1)      # (B, 2H)
                gates = jnp.dot(xh, wf,
                                preferred_element_type=jnp.float32) + bs
            i_g, f_g, g_g, o_g = activate(gates)
            c[l] = f_g * c[l] + i_g * g_g
            h[l] = o_g * jnp.tanh(c[l])

    # ---- FC head (Dropout is identity in eval mode) ----
    out_ref[...] = (jnp.dot(h[num_layers - 1], fcw_ref[...],
                            preferred_element_type=jnp.float32)
                    + fcb_ref[...])


# --------------------------- wrapper ------------------------------------------

def lstm_sentiment_forward(token_ids, params):
    """Full forward pass equivalent to LSTMSentiment.forward (eval mode)."""
    B, T = token_ids.shape
    emb = params["embedding"]                                  # (V, D)
    V, D = emb.shape
    layers = params["lstm"]
    L = len(layers)
    H = layers[0]["whh_t"].shape[0]
    O = params["fc_w_t"].shape[1]

    # Pre-scale the g-gate columns by 2 (exact power-of-two scaling in f32) so
    # the kernel does a single sigmoid per step (tanh(g) = 2*sigmoid(2g) - 1).
    scale = jnp.ones((1, 4 * H), jnp.float32).at[:, 2 * H:3 * H].set(2.0)

    # Time-major token ids: row t*B + b.
    ids_tm = token_ids.astype(jnp.int32).T.reshape(T * B, 1)

    inputs = [ids_tm, emb]
    l0 = layers[0]
    inputs += [l0["wih_t"] * scale, l0["whh_t"] * scale, l0["bias"] * scale]
    for layer in layers[1:]:
        # Fused [W_ih ; W_hh]: one (B,2H)x(2H,4H) matmul per recurrent step.
        w_fused = jnp.concatenate([layer["wih_t"], layer["whh_t"]], axis=0)
        inputs += [w_fused * scale, layer["bias"] * scale]
    inputs += [params["fc_w_t"], params["fc_b"]]

    vmem = pl.BlockSpec(memory_space=pltpu.MemorySpace.VMEM)
    in_specs = [vmem] * len(inputs)

    kern = functools.partial(_fused_forward_kernel, B=B, T=T, D=D, H=H, V=V,
                             num_layers=L)
    return pl.pallas_call(
        kern,
        out_shape=jax.ShapeDtypeStruct((B, O), jnp.float32),
        in_specs=in_specs,
        out_specs=vmem,
    )(*inputs)


# --------------------------- pure-JAX reference -------------------------------

def lstm_sentiment_reference(token_ids, params):
    emb = params["embedding"][token_ids]                       # (B, T, D)
    B = emb.shape[0]
    x = jnp.transpose(emb, (1, 0, 2))                          # (T, B, D)
    for layer in params["lstm"]:
        H = layer["whh_t"].shape[0]
        wih_t, whh_t, bias = layer["wih_t"], layer["whh_t"], layer["bias"]

        def step(carry, x_t):
            h_prev, c_prev = carry
            gates = x_t @ wih_t + h_prev @ whh_t + bias[0]
            i_g = jax.nn.sigmoid(gates[:, 0 * H:1 * H])
            f_g = jax.nn.sigmoid(gates[:, 1 * H:2 * H])
            g_g = jnp.tanh(gates[:, 2 * H:3 * H])
            o_g = jax.nn.sigmoid(gates[:, 3 * H:4 * H])
            c = f_g * c_prev + i_g * g_g
            h = o_g * jnp.tanh(c)
            return (h, c), h

        init = (jnp.zeros((B, H), jnp.float32), jnp.zeros((B, H), jnp.float32))
        _, x = jax.lax.scan(step, init, x)
    h_last = x[-1]
    return h_last @ params["fc_w_t"] + params["fc_b"]


# --------------------------- parameter init -----------------------------------

def init_params(key, vocab, emb_dim, hidden, out_dim, num_layers):
    keys = jax.random.split(key, 3 + 4 * num_layers)
    k = iter(keys)
    params = {}
    params["embedding"] = jax.random.normal(next(k), (vocab, emb_dim),
                                            jnp.float32)
    bound = 1.0 / jnp.sqrt(hidden)
    layers = []
    d_in = emb_dim
    for _ in range(num_layers):
        w_ih = jax.random.uniform(next(k), (4 * hidden, d_in), jnp.float32,
                                  -bound, bound)
        w_hh = jax.random.uniform(next(k), (4 * hidden, hidden), jnp.float32,
                                  -bound, bound)
        b_ih = jax.random.uniform(next(k), (4 * hidden,), jnp.float32,
                                  -bound, bound)
        b_hh = jax.random.uniform(next(k), (4 * hidden,), jnp.float32,
                                  -bound, bound)
        layers.append({
            "wih_t": jnp.asarray(w_ih.T),                      # (D_in, 4H)
            "whh_t": jnp.asarray(w_hh.T),                      # (H, 4H)
            "bias": (b_ih + b_hh)[None, :],                    # (1, 4H)
        })
        d_in = hidden
    params["lstm"] = layers
    fc_bound = 1.0 / jnp.sqrt(hidden)
    w_fc = jax.random.uniform(next(k), (out_dim, hidden), jnp.float32,
                              -fc_bound, fc_bound)
    b_fc = jax.random.uniform(next(k), (out_dim,), jnp.float32,
                              -fc_bound, fc_bound)
    params["fc_w_t"] = jnp.asarray(w_fc.T)                     # (H, O)
    params["fc_b"] = b_fc[None, :]                             # (1, O)
    return params


# --------------------------- main ---------------------------------------------

if __name__ == "__main__":
    B, T = 2, 8
    vocab, emb_dim, hidden, out_dim, num_layers = 50, 128, 32, 2, 2

    key = jax.random.PRNGKey(0)
    k_params, k_tokens = jax.random.split(key)

    params = init_params(k_params, vocab, emb_dim, hidden, out_dim, num_layers)
    token_ids = jax.random.randint(k_tokens, (B, T), 0, vocab, dtype=jnp.int32)

    out = lstm_sentiment_forward(token_ids, params)
    out = jax.block_until_ready(out)

    ref = lstm_sentiment_reference(token_ids, params)
    assert out.shape == (B, out_dim)
    assert jnp.allclose(out, ref, atol=1e-3, rtol=1e-3), (out, ref)

    print("KERNEL_OK")
</pallas_src>

<mosaic_0001>
module attributes {stable_mosaic.version = 11 : i64} {
  func.func @_fused_forward_kernel(%arg0: memref<16x1xi32, #tpu.memory_space<vmem>>, %arg1: memref<50x128xf32, #tpu.memory_space<vmem>>, %arg2: memref<128x128xf32, #tpu.memory_space<vmem>>, %arg3: memref<32x128xf32, #tpu.memory_space<vmem>>, %arg4: memref<1x128xf32, #tpu.memory_space<vmem>>, %arg5: memref<64x128xf32, #tpu.memory_space<vmem>>, %arg6: memref<1x128xf32, #tpu.memory_space<vmem>>, %arg7: memref<32x2xf32, #tpu.memory_space<vmem>>, %arg8: memref<1x2xf32, #tpu.memory_space<vmem>>, %arg9: memref<2x2xf32, #tpu.memory_space<vmem>>) attributes {dimension_semantics = [], scalar_prefetch = 0 : i64, scratch_operands = 0 : i64, tpu.core_type = #tpu.core_type<tc>} {
    %c0 = arith.constant 0 : index
    %c0_0 = arith.constant 0 : index
    %0 = vector.load %arg0[%c0, %c0_0] : memref<16x1xi32, #tpu.memory_space<vmem>>, vector<16x1xi32>
    %1 = tpu.iota {dimensions = array<i32: 1>} : vector<16x50xi32>
    %2 = vector.broadcast %0 : vector<16x1xi32> to vector<16x50xi32>
    %3 = arith.cmpi eq, %1, %2 : vector<16x50xi32>
    %4 = arith.extui %3 : vector<16x50xi1> to vector<16x50xi32>
    %5 = arith.sitofp %4 : vector<16x50xi32> to vector<16x50xf32>
    %c0_1 = arith.constant 0 : index
    %c0_2 = arith.constant 0 : index
    %6 = vector.load %arg1[%c0_1, %c0_2] : memref<50x128xf32, #tpu.memory_space<vmem>>, vector<50x128xf32>
    %cst = arith.constant dense<0.000000e+00> : vector<16x128xf32>
    %7 = tpu.matmul %5, %6, %cst {dimension_numbers = #tpu.dot_dimension_numbers<[1], [0], [0], [1], [0, 0, 1, 1], [], []>} : vector<16x50xf32>, vector<50x128xf32>, vector<16x128xf32> -> vector<16x128xf32>
    %c0_3 = arith.constant 0 : index
    %c0_4 = arith.constant 0 : index
    %8 = vector.load %arg2[%c0_3, %c0_4] : memref<128x128xf32, #tpu.memory_space<vmem>>, vector<128x128xf32>
    %c0_5 = arith.constant 0 : index
    %c0_6 = arith.constant 0 : index
    %9 = vector.load %arg3[%c0_5, %c0_6] : memref<32x128xf32, #tpu.memory_space<vmem>>, vector<32x128xf32>
    %c0_7 = arith.constant 0 : index
    %c0_8 = arith.constant 0 : index
    %10 = vector.load %arg4[%c0_7, %c0_8] : memref<1x128xf32, #tpu.memory_space<vmem>>, vector<1x128xf32>
    %cst_9 = arith.constant dense<0.000000e+00> : vector<16x128xf32>
    %11 = tpu.matmul %7, %8, %cst_9 {dimension_numbers = #tpu.dot_dimension_numbers<[1], [0], [0], [1], [0, 0, 1, 1], [], []>} : vector<16x128xf32>, vector<128x128xf32>, vector<16x128xf32> -> vector<16x128xf32>
    %12 = vector.broadcast %10 : vector<1x128xf32> to vector<16x128xf32>
    %13 = arith.addf %11, %12 : vector<16x128xf32>
    %c0_10 = arith.constant 0 : index
    %c0_11 = arith.constant 0 : index
    %14 = vector.load %arg5[%c0_10, %c0_11] : memref<64x128xf32, #tpu.memory_space<vmem>>, vector<64x128xf32>
    %c0_12 = arith.constant 0 : index
    %c0_13 = arith.constant 0 : index
    %15 = vector.load %arg6[%c0_12, %c0_13] : memref<1x128xf32, #tpu.memory_space<vmem>>, vector<1x128xf32>
    %cst_14 = arith.constant 0.000000e+00 : f32
    %16 = vector.broadcast %cst_14 : f32 to vector<2x32xf32>
    %17 = vector.extract_strided_slice %13 {offsets = [0, 0], sizes = [2, 128], strides = [1, 1]} : vector<16x128xf32> to vector<2x128xf32>
    %cst_15 = arith.constant dense<0.000000e+00> : vector<2x128xf32>
    %18 = tpu.matmul %16, %9, %cst_15 {dimension_numbers = #tpu.dot_dimension_numbers<[1], [0], [0], [1], [0, 0, 1, 1], [], []>} : vector<2x32xf32>, vector<32x128xf32>, vector<2x128xf32> -> vector<2x128xf32>
    %19 = arith.addf %17, %18 : vector<2x128xf32>
    %20 = arith.negf %19 : vector<2x128xf32>
    %21 = math.exp %20 : vector<2x128xf32>
    %cst_16 = arith.constant 1.000000e+00 : f32
    %22 = vector.broadcast %cst_16 : f32 to vector<2x128xf32>
    %23 = arith.addf %22, %21 : vector<2x128xf32>
    %24 = arith.divf %22, %23 : vector<2x128xf32>
    %25 = vector.extract_strided_slice %24 {offsets = [0, 0], sizes = [2, 32], strides = [1, 1]} : vector<2x128xf32> to vector<2x32xf32>
    %26 = vector.extract_strided_slice %24 {offsets = [0, 32], sizes = [2, 32], strides = [1, 1]} : vector<2x128xf32> to vector<2x32xf32>
    %27 = vector.extract_strided_slice %24 {offsets = [0, 64], sizes = [2, 32], strides = [1, 1]} : vector<2x128xf32> to vector<2x32xf32>
    %cst_17 = arith.constant 2.000000e+00 : f32
    %28 = vector.broadcast %cst_17 : f32 to vector<2x32xf32>
    %29 = arith.mulf %28, %27 : vector<2x32xf32>
    %cst_18 = arith.constant 1.000000e+00 : f32
    %30 = vector.broadcast %cst_18 : f32 to vector<2x32xf32>
    %31 = arith.subf %29, %30 : vector<2x32xf32>
    %32 = vector.extract_strided_slice %24 {offsets = [0, 96], sizes = [2, 32], strides = [1, 1]} : vector<2x128xf32> to vector<2x32xf32>
    %33 = arith.mulf %26, %16 : vector<2x32xf32>
    %34 = arith.mulf %25, %31 : vector<2x32xf32>
    %35 = arith.addf %33, %34 : vector<2x32xf32>
    %36 = math.tanh %35 : vector<2x32xf32>
    %37 = arith.mulf %32, %36 : vector<2x32xf32>
    %38 = tpu.concatenate %37, %16 in 1 : vector<2x32xf32>, vector<2x32xf32> -> vector<2x64xf32>
    %cst_19 = arith.constant dense<0.000000e+00> : vector<2x128xf32>
    %39 = tpu.matmul %38, %14, %cst_19 {dimension_numbers = #tpu.dot_dimension_numbers<[1], [0], [0], [1], [0, 0, 1, 1], [], []>} : vector<2x64xf32>, vector<64x128xf32>, vector<2x128xf32> -> vector<2x128xf32>
    %40 = vector.broadcast %15 : vector<1x128xf32> to vector<2x128xf32>
    %41 = arith.addf %39, %40 : vector<2x128xf32>
    %42 = arith.negf %41 : vector<2x128xf32>
    %43 = math.exp %42 : vector<2x128xf32>
    %cst_20 = arith.constant 1.000000e+00 : f32
    %44 = vector.broadcast %cst_20 : f32 to vector<2x128xf32>
    %45 = arith.addf %44, %43 : vector<2x128xf32>
    %46 = arith.divf %44, %45 : vector<2x128xf32>
    %47 = vector.extract_strided_slice %46 {offsets = [0, 0], sizes = [2, 32], strides = [1, 1]} : vector<2x128xf32> to vector<2x32xf32>
    %48 = vector.extract_strided_slice %46 {offsets = [0, 32], sizes = [2, 32], strides = [1, 1]} : vector<2x128xf32> to vector<2x32xf32>
    %49 = vector.extract_strided_slice %46 {offsets = [0, 64], sizes = [2, 32], strides = [1, 1]} : vector<2x128xf32> to vector<2x32xf32>
    %cst_21 = arith.constant 2.000000e+00 : f32
    %50 = vector.broadcast %cst_21 : f32 to vector<2x32xf32>
    %51 = arith.mulf %50, %49 : vector<2x32xf32>
    %cst_22 = arith.constant 1.000000e+00 : f32
    %52 = vector.broadcast %cst_22 : f32 to vector<2x32xf32>
    %53 = arith.subf %51, %52 : vector<2x32xf32>
    %54 = vector.extract_strided_slice %46 {offsets = [0, 96], sizes = [2, 32], strides = [1, 1]} : vector<2x128xf32> to vector<2x32xf32>
    %55 = arith.mulf %48, %16 : vector<2x32xf32>
    %56 = arith.mulf %47, %53 : vector<2x32xf32>
    %57 = arith.addf %55, %56 : vector<2x32xf32>
    %58 = math.tanh %57 : vector<2x32xf32>
    %59 = arith.mulf %54, %58 : vector<2x32xf32>
    %60 = vector.extract_strided_slice %13 {offsets = [2, 0], sizes = [2, 128], strides = [1, 1]} : vector<16x128xf32> to vector<2x128xf32>
    %cst_23 = arith.constant dense<0.000000e+00> : vector<2x128xf32>
    %61 = tpu.matmul %37, %9, %cst_23 {dimension_numbers = #tpu.dot_dimension_numbers<[1], [0], [0], [1], [0, 0, 1, 1], [], []>} : vector<2x32xf32>, vector<32x128xf32>, vector<2x128xf32> -> vector<2x128xf32>
    %62 = arith.addf %60, %61 : vector<2x128xf32>
    %63 = arith.negf %62 : vector<2x128xf32>
    %64 = math.exp %63 : vector<2x128xf32>
    %cst_24 = arith.constant 1.000000e+00 : f32
    %65 = vector.broadcast %cst_24 : f32 to vector<2x128xf32>
    %66 = arith.addf %65, %64 : vector<2x128xf32>
    %67 = arith.divf %65, %66 : vector<2x128xf32>
    %68 = vector.extract_strided_slice %67 {offsets = [0, 0], sizes = [2, 32], strides = [1, 1]} : vector<2x128xf32> to vector<2x32xf32>
    %69 = vector.extract_strided_slice %67 {offsets = [0, 32], sizes = [2, 32], strides = [1, 1]} : vector<2x128xf32> to vector<2x32xf32>
    %70 = vector.extract_strided_slice %67 {offsets = [0, 64], sizes = [2, 32], strides = [1, 1]} : vector<2x128xf32> to vector<2x32xf32>
    %cst_25 = arith.constant 2.000000e+00 : f32
    %71 = vector.broadcast %cst_25 : f32 to vector<2x32xf32>
    %72 = arith.mulf %71, %70 : vector<2x32xf32>
    %cst_26 = arith.constant 1.000000e+00 : f32
    %73 = vector.broadcast %cst_26 : f32 to vector<2x32xf32>
    %74 = arith.subf %72, %73 : vector<2x32xf32>
    %75 = vector.extract_strided_slice %67 {offsets = [0, 96], sizes = [2, 32], strides = [1, 1]} : vector<2x128xf32> to vector<2x32xf32>
    %76 = arith.mulf %69, %35 : vector<2x32xf32>
    %77 = arith.mulf %68, %74 : vector<2x32xf32>
    %78 = arith.addf %76, %77 : vector<2x32xf32>
    %79 = math.tanh %78 : vector<2x32xf32>
    %80 = arith.mulf %75, %79 : vector<2x32xf32>
    %81 = tpu.concatenate %80, %59 in 1 : vector<2x32xf32>, vector<2x32xf32> -> vector<2x64xf32>
    %cst_27 = arith.constant dense<0.000000e+00> : vector<2x128xf32>
    %82 = tpu.matmul %81, %14, %cst_27 {dimension_numbers = #tpu.dot_dimension_numbers<[1], [0], [0], [1], [0, 0, 1, 1], [], []>} : vector<2x64xf32>, vector<64x128xf32>, vector<2x128xf32> -> vector<2x128xf32>
    %83 = vector.broadcast %15 : vector<1x128xf32> to vector<2x128xf32>
    %84 = arith.addf %82, %83 : vector<2x128xf32>
    %85 = arith.negf %84 : vector<2x128xf32>
    %86 = math.exp %85 : vector<2x128xf32>
    %cst_28 = arith.constant 1.000000e+00 : f32
    %87 = vector.broadcast %cst_28 : f32 to vector<2x128xf32>
    %88 = arith.addf %87, %86 : vector<2x128xf32>
    %89 = arith.divf %87, %88 : vector<2x128xf32>
    %90 = vector.extract_strided_slice %89 {offsets = [0, 0], sizes = [2, 32], strides = [1, 1]} : vector<2x128xf32> to vector<2x32xf32>
    %91 = vector.extract_strided_slice %89 {offsets = [0, 32], sizes = [2, 32], strides = [1, 1]} : vector<2x128xf32> to vector<2x32xf32>
    %92 = vector.extract_strided_slice %89 {offsets = [0, 64], sizes = [2, 32], strides = [1, 1]} : vector<2x128xf32> to vector<2x32xf32>
    %cst_29 = arith.constant 2.000000e+00 : f32
    %93 = vector.broadcast %cst_29 : f32 to vector<2x32xf32>
    %94 = arith.mulf %93, %92 : vector<2x32xf32>
    %cst_30 = arith.constant 1.000000e+00 : f32
    %95 = vector.broadcast %cst_30 : f32 to vector<2x32xf32>
    %96 = arith.subf %94, %95 : vector<2x32xf32>
    %97 = vector.extract_strided_slice %89 {offsets = [0, 96], sizes = [2, 32], strides = [1, 1]} : vector<2x128xf32> to vector<2x32xf32>
    %98 = arith.mulf %91, %57 : vector<2x32xf32>
    %99 = arith.mulf %90, %96 : vector<2x32xf32>
    %100 = arith.addf %98, %99 : vector<2x32xf32>
    %101 = math.tanh %100 : vector<2x32xf32>
    %102 = arith.mulf %97, %101 : vector<2x32xf32>
    %103 = vector.extract_strided_slice %13 {offsets = [4, 0], sizes = [2, 128], strides = [1, 1]} : vector<16x128xf32> to vector<2x128xf32>
    %cst_31 = arith.constant dense<0.000000e+00> : vector<2x128xf32>
    %104 = tpu.matmul %80, %9, %cst_31 {dimension_numbers = #tpu.dot_dimension_numbers<[1], [0], [0], [1], [0, 0, 1, 1], [], []>} : vector<2x32xf32>, vector<32x128xf32>, vector<2x128xf32> -> vector<2x128xf32>
    %105 = arith.addf %103, %104 : vector<2x128xf32>
    %106 = arith.negf %105 : vector<2x128xf32>
    %107 = math.exp %106 : vector<2x128xf32>
    %cst_32 = arith.constant 1.000000e+00 : f32
    %108 = vector.broadcast %cst_32 : f32 to vector<2x128xf32>
    %109 = arith.addf %108, %107 : vector<2x128xf32>
    %110 = arith.divf %108, %109 : vector<2x128xf32>
    %111 = vector.extract_strided_slice %110 {offsets = [0, 0], sizes = [2, 32], strides = [1, 1]} : vector<2x128xf32> to vector<2x32xf32>
    %112 = vector.extract_strided_slice %110 {offsets = [0, 32], sizes = [2, 32], strides = [1, 1]} : vector<2x128xf32> to vector<2x32xf32>
    %113 = vector.extract_strided_slice %110 {offsets = [0, 64], sizes = [2, 32], strides = [1, 1]} : vector<2x128xf32> to vector<2x32xf32>
    %cst_33 = arith.constant 2.000000e+00 : f32
    %114 = vector.broadcast %cst_33 : f32 to vector<2x32xf32>
    %115 = arith.mulf %114, %113 : vector<2x32xf32>
    %cst_34 = arith.constant 1.000000e+00 : f32
    %116 = vector.broadcast %cst_34 : f32 to vector<2x32xf32>
    %117 = arith.subf %115, %116 : vector<2x32xf32>
    %118 = vector.extract_strided_slice %110 {offsets = [0, 96], sizes = [2, 32], strides = [1, 1]} : vector<2x128xf32> to vector<2x32xf32>
    %119 = arith.mulf %112, %78 : vector<2x32xf32>
    %120 = arith.mulf %111, %117 : vector<2x32xf32>
    %121 = arith.addf %119, %120 : vector<2x32xf32>
    %122 = math.tanh %121 : vector<2x32xf32>
    %123 = arith.mulf %118, %122 : vector<2x32xf32>
    %124 = tpu.concatenate %123, %102 in 1 : vector<2x32xf32>, vector<2x32xf32> -> vector<2x64xf32>
    %cst_35 = arith.constant dense<0.000000e+00> : vector<2x128xf32>
    %125 = tpu.matmul %124, %14, %cst_35 {dimension_numbers = #tpu.dot_dimension_numbers<[1], [0], [0], [1], [0, 0, 1, 1], [], []>} : vector<2x64xf32>, vector<64x128xf32>, vector<2x128xf32> -> vector<2x128xf32>
    %126 = vector.broadcast %15 : vector<1x128xf32> to vector<2x128xf32>
    %127 = arith.addf %125, %126 : vector<2x128xf32>
    %128 = arith.negf %127 : vector<2x128xf32>
    %129 = math.exp %128 : vector<2x128xf32>
    %cst_36 = arith.constant 1.000000e+00 : f32
    %130 = vector.broadcast %cst_36 : f32 to vector<2x128xf32>
    %131 = arith.addf %130, %129 : vector<2x128xf32>
    %132 = arith.divf %130, %131 : vector<2x128xf32>
    %133 = vector.extract_strided_slice %132 {offsets = [0, 0], sizes = [2, 32], strides = [1, 1]} : vector<2x128xf32> to vector<2x32xf32>
    %134 = vector.extract_strided_slice %132 {offsets = [0, 32], sizes = [2, 32], strides = [1, 1]} : vector<2x128xf32> to vector<2x32xf32>
    %135 = vector.extract_strided_slice %132 {offsets = [0, 64], sizes = [2, 32], strides = [1, 1]} : vector<2x128xf32> to vector<2x32xf32>
    %cst_37 = arith.constant 2.000000e+00 : f32
    %136 = vector.broadcast %cst_37 : f32 to vector<2x32xf32>
    %137 = arith.mulf %136, %135 : vector<2x32xf32>
    %cst_38 = arith.constant 1.000000e+00 : f32
    %138 = vector.broadcast %cst_38 : f32 to vector<2x32xf32>
    %139 = arith.subf %137, %138 : vector<2x32xf32>
    %140 = vector.extract_strided_slice %132 {offsets = [0, 96], sizes = [2, 32], strides = [1, 1]} : vector<2x128xf32> to vector<2x32xf32>
    %141 = arith.mulf %134, %100 : vector<2x32xf32>
    %142 = arith.mulf %133, %139 : vector<2x32xf32>
    %143 = arith.addf %141, %142 : vector<2x32xf32>
    %144 = math.tanh %143 : vector<2x32xf32>
    %145 = arith.mulf %140, %144 : vector<2x32xf32>
    %146 = vector.extract_strided_slice %13 {offsets = [6, 0], sizes = [2, 128], strides = [1, 1]} : vector<16x128xf32> to vector<2x128xf32>
    %cst_39 = arith.constant dense<0.000000e+00> : vector<2x128xf32>
    %147 = tpu.matmul %123, %9, %cst_39 {dimension_numbers = #tpu.dot_dimension_numbers<[1], [0], [0], [1], [0, 0, 1, 1], [], []>} : vector<2x32xf32>, vector<32x128xf32>, vector<2x128xf32> -> vector<2x128xf32>
    %148 = arith.addf %146, %147 : vector<2x128xf32>
    %149 = arith.negf %148 : vector<2x128xf32>
    %150 = math.exp %149 : vector<2x128xf32>
    %cst_40 = arith.constant 1.000000e+00 : f32
    %151 = vector.broadcast %cst_40 : f32 to vector<2x128xf32>
    %152 = arith.addf %151, %150 : vector<2x128xf32>
    %153 = arith.divf %151, %152 : vector<2x128xf32>
    %154 = vector.extract_strided_slice %153 {offsets = [0, 0], sizes = [2, 32], strides = [1, 1]} : vector<2x128xf32> to vector<2x32xf32>
    %155 = vector.extract_strided_slice %153 {offsets = [0, 32], sizes = [2, 32], strides = [1, 1]} : vector<2x128xf32> to vector<2x32xf32>
    %156 = vector.extract_strided_slice %153 {offsets = [0, 64], sizes = [2, 32], strides = [1, 1]} : vector<2x128xf32> to vector<2x32xf32>
    %cst_41 = arith.constant 2.000000e+00 : f32
    %157 = vector.broadcast %cst_41 : f32 to vector<2x32xf32>
    %158 = arith.mulf %157, %156 : vector<2x32xf32>
    %cst_42 = arith.constant 1.000000e+00 : f32
    %159 = vector.broadcast %cst_42 : f32 to vector<2x32xf32>
    %160 = arith.subf %158, %159 : vector<2x32xf32>
    %161 = vector.extract_strided_slice %153 {offsets = [0, 96], sizes = [2, 32], strides = [1, 1]} : vector<2x128xf32> to vector<2x32xf32>
    %162 = arith.mulf %155, %121 : vector<2x32xf32>
    %163 = arith.mulf %154, %160 : vector<2x32xf32>
    %164 = arith.addf %162, %163 : vector<2x32xf32>
    %165 = math.tanh %164 : vector<2x32xf32>
    %166 = arith.mulf %161, %165 : vector<2x32xf32>
    %167 = tpu.concatenate %166, %145 in 1 : vector<2x32xf32>, vector<2x32xf32> -> vector<2x64xf32>
    %cst_43 = arith.constant dense<0.000000e+00> : vector<2x128xf32>
    %168 = tpu.matmul %167, %14, %cst_43 {dimension_numbers = #tpu.dot_dimension_numbers<[1], [0], [0], [1], [0, 0, 1, 1], [], []>} : vector<2x64xf32>, vector<64x128xf32>, vector<2x128xf32> -> vector<2x128xf32>
    %169 = vector.broadcast %15 : vector<1x128xf32> to vector<2x128xf32>
    %170 = arith.addf %168, %169 : vector<2x128xf32>
    %171 = arith.negf %170 : vector<2x128xf32>
    %172 = math.exp %171 : vector<2x128xf32>
    %cst_44 = arith.constant 1.000000e+00 : f32
    %173 = vector.broadcast %cst_44 : f32 to vector<2x128xf32>
    %174 = arith.addf %173, %172 : vector<2x128xf32>
    %175 = arith.divf %173, %174 : vector<2x128xf32>
    %176 = vector.extract_strided_slice %175 {offsets = [0, 0], sizes = [2, 32], strides = [1, 1]} : vector<2x128xf32> to vector<2x32xf32>
    %177 = vector.extract_strided_slice %175 {offsets = [0, 32], sizes = [2, 32], strides = [1, 1]} : vector<2x128xf32> to vector<2x32xf32>
    %178 = vector.extract_strided_slice %175 {offsets = [0, 64], sizes = [2, 32], strides = [1, 1]} : vector<2x128xf32> to vector<2x32xf32>
    %cst_45 = arith.constant 2.000000e+00 : f32
    %179 = vector.broadcast %cst_45 : f32 to vector<2x32xf32>
    %180 = arith.mulf %179, %178 : vector<2x32xf32>
    %cst_46 = arith.constant 1.000000e+00 : f32
    %181 = vector.broadcast %cst_46 : f32 to vector<2x32xf32>
    %182 = arith.subf %180, %181 : vector<2x32xf32>
    %183 = vector.extract_strided_slice %175 {offsets = [0, 96], sizes = [2, 32], strides = [1, 1]} : vector<2x128xf32> to vector<2x32xf32>
    %184 = arith.mulf %177, %143 : vector<2x32xf32>
    %185 = arith.mulf %176, %182 : vector<2x32xf32>
    %186 = arith.addf %184, %185 : vector<2x32xf32>
    %187 = math.tanh %186 : vector<2x32xf32>
    %188 = arith.mulf %183, %187 : vector<2x32xf32>
    %189 = vector.extract_strided_slice %13 {offsets = [8, 0], sizes = [2, 128], strides = [1, 1]} : vector<16x128xf32> to vector<2x128xf32>
    %cst_47 = arith.constant dense<0.000000e+00> : vector<2x128xf32>
    %190 = tpu.matmul %166, %9, %cst_47 {dimension_numbers = #tpu.dot_dimension_numbers<[1], [0], [0], [1], [0, 0, 1, 1], [], []>} : vector<2x32xf32>, vector<32x128xf32>, vector<2x128xf32> -> vector<2x128xf32>
    %191 = arith.addf %189, %190 : vector<2x128xf32>
    %192 = arith.negf %191 : vector<2x128xf32>
    %193 = math.exp %192 : vector<2x128xf32>
    %cst_48 = arith.constant 1.000000e+00 : f32
    %194 = vector.broadcast %cst_48 : f32 to vector<2x128xf32>
    %195 = arith.addf %194, %193 : vector<2x128xf32>
    %196 = arith.divf %194, %195 : vector<2x128xf32>
    %197 = vector.extract_strided_slice %196 {offsets = [0, 0], sizes = [2, 32], strides = [1, 1]} : vector<2x128xf32> to vector<2x32xf32>
    %198 = vector.extract_strided_slice %196 {offsets = [0, 32], sizes = [2, 32], strides = [1, 1]} : vector<2x128xf32> to vector<2x32xf32>
    %199 = vector.extract_strided_slice %196 {offsets = [0, 64], sizes = [2, 32], strides = [1, 1]} : vector<2x128xf32> to vector<2x32xf32>
    %cst_49 = arith.constant 2.000000e+00 : f32
    %200 = vector.broadcast %cst_49 : f32 to vector<2x32xf32>
    %201 = arith.mulf %200, %199 : vector<2x32xf32>
    %cst_50 = arith.constant 1.000000e+00 : f32
    %202 = vector.broadcast %cst_50 : f32 to vector<2x32xf32>
    %203 = arith.subf %201, %202 : vector<2x32xf32>
    %204 = vector.extract_strided_slice %196 {offsets = [0, 96], sizes = [2, 32], strides = [1, 1]} : vector<2x128xf32> to vector<2x32xf32>
    %205 = arith.mulf %198, %164 : vector<2x32xf32>
    %206 = arith.mulf %197, %203 : vector<2x32xf32>
    %207 = arith.addf %205, %206 : vector<2x32xf32>
    %208 = math.tanh %207 : vector<2x32xf32>
    %209 = arith.mulf %204, %208 : vector<2x32xf32>
    %210 = tpu.concatenate %209, %188 in 1 : vector<2x32xf32>, vector<2x32xf32> -> vector<2x64xf32>
    %cst_51 = arith.constant dense<0.000000e+00> : vector<2x128xf32>
    %211 = tpu.matmul %210, %14, %cst_51 {dimension_numbers = #tpu.dot_dimension_numbers<[1], [0], [0], [1], [0, 0, 1, 1], [], []>} : vector<2x64xf32>, vector<64x128xf32>, vector<2x128xf32> -> vector<2x128xf32>
    %212 = vector.broadcast %15 : vector<1x128xf32> to vector<2x128xf32>
    %213 = arith.addf %211, %212 : vector<2x128xf32>
    %214 = arith.negf %213 : vector<2x128xf32>
    %215 = math.exp %214 : vector<2x128xf32>
    %cst_52 = arith.constant 1.000000e+00 : f32
    %216 = vector.broadcast %cst_52 : f32 to vector<2x128xf32>
    %217 = arith.addf %216, %215 : vector<2x128xf32>
    %218 = arith.divf %216, %217 : vector<2x128xf32>
    %219 = vector.extract_strided_slice %218 {offsets = [0, 0], sizes = [2, 32], strides = [1, 1]} : vector<2x128xf32> to vector<2x32xf32>
    %220 = vector.extract_strided_slice %218 {offsets = [0, 32], sizes = [2, 32], strides = [1, 1]} : vector<2x128xf32> to vector<2x32xf32>
    %221 = vector.extract_strided_slice %218 {offsets = [0, 64], sizes = [2, 32], strides = [1, 1]} : vector<2x128xf32> to vector<2x32xf32>
    %cst_53 = arith.constant 2.000000e+00 : f32
    %222 = vector.broadcast %cst_53 : f32 to vector<2x32xf32>
    %223 = arith.mulf %222, %221 : vector<2x32xf32>
    %cst_54 = arith.constant 1.000000e+00 : f32
    %224 = vector.broadcast %cst_54 : f32 to vector<2x32xf32>
    %225 = arith.subf %223, %224 : vector<2x32xf32>
    %226 = vector.extract_strided_slice %218 {offsets = [0, 96], sizes = [2, 32], strides = [1, 1]} : vector<2x128xf32> to vector<2x32xf32>
    %227 = arith.mulf %220, %186 : vector<2x32xf32>
    %228 = arith.mulf %219, %225 : vector<2x32xf32>
    %229 = arith.addf %227, %228 : vector<2x32xf32>
    %230 = math.tanh %229 : vector<2x32xf32>
    %231 = arith.mulf %226, %230 : vector<2x32xf32>
    %232 = vector.extract_strided_slice %13 {offsets = [10, 0], sizes = [2, 128], strides = [1, 1]} : vector<16x128xf32> to vector<2x128xf32>
    %cst_55 = arith.constant dense<0.000000e+00> : vector<2x128xf32>
    %233 = tpu.matmul %209, %9, %cst_55 {dimension_numbers = #tpu.dot_dimension_numbers<[1], [0], [0], [1], [0, 0, 1, 1], [], []>} : vector<2x32xf32>, vector<32x128xf32>, vector<2x128xf32> -> vector<2x128xf32>
    %234 = arith.addf %232, %233 : vector<2x128xf32>
    %235 = arith.negf %234 : vector<2x128xf32>
    %236 = math.exp %235 : vector<2x128xf32>
    %cst_56 = arith.constant 1.000000e+00 : f32
    %237 = vector.broadcast %cst_56 : f32 to vector<2x128xf32>
    %238 = arith.addf %237, %236 : vector<2x128xf32>
    %239 = arith.divf %237, %238 : vector<2x128xf32>
    %240 = vector.extract_strided_slice %239 {offsets = [0, 0], sizes = [2, 32], strides = [1, 1]} : vector<2x128xf32> to vector<2x32xf32>
    %241 = vector.extract_strided_slice %239 {offsets = [0, 32], sizes = [2, 32], strides = [1, 1]} : vector<2x128xf32> to vector<2x32xf32>
    %242 = vector.extract_strided_slice %239 {offsets = [0, 64], sizes = [2, 32], strides = [1, 1]} : vector<2x128xf32> to vector<2x32xf32>
    %cst_57 = arith.constant 2.000000e+00 : f32
    %243 = vector.broadcast %cst_57 : f32 to vector<2x32xf32>
    %244 = arith.mulf %243, %242 : vector<2x32xf32>
    %cst_58 = arith.constant 1.000000e+00 : f32
    %245 = vector.broadcast %cst_58 : f32 to vector<2x32xf32>
    %246 = arith.subf %244, %245 : vector<2x32xf32>
    %247 = vector.extract_strided_slice %239 {offsets = [0, 96], sizes = [2, 32], strides = [1, 1]} : vector<2x128xf32> to vector<2x32xf32>
    %248 = arith.mulf %241, %207 : vector<2x32xf32>
    %249 = arith.mulf %240, %246 : vector<2x32xf32>
    %250 = arith.addf %248, %249 : vector<2x32xf32>
    %251 = math.tanh %250 : vector<2x32xf32>
    %252 = arith.mulf %247, %251 : vector<2x32xf32>
    %253 = tpu.concatenate %252, %231 in 1 : vector<2x32xf32>, vector<2x32xf32> -> vector<2x64xf32>
    %cst_59 = arith.constant dense<0.000000e+00> : vector<2x128xf32>
    %254 = tpu.matmul %253, %14, %cst_59 {dimension_numbers = #tpu.dot_dimension_numbers<[1], [0], [0], [1], [0, 0, 1, 1], [], []>} : vector<2x64xf32>, vector<64x128xf32>, vector<2x128xf32> -> vector<2x128xf32>
    %255 = vector.broadcast %15 : vector<1x128xf32> to vector<2x128xf32>
    %256 = arith.addf %254, %255 : vector<2x128xf32>
    %257 = arith.negf %256 : vector<2x128xf32>
    %258 = math.exp %257 : vector<2x128xf32>
    %cst_60 = arith.constant 1.000000e+00 : f32
    %259 = vector.broadcast %cst_60 : f32 to vector<2x128xf32>
    %260 = arith.addf %259, %258 : vector<2x128xf32>
    %261 = arith.divf %259, %260 : vector<2x128xf32>
    %262 = vector.extract_strided_slice %261 {offsets = [0, 0], sizes = [2, 32], strides = [1, 1]} : vector<2x128xf32> to vector<2x32xf32>
    %263 = vector.extract_strided_slice %261 {offsets = [0, 32], sizes = [2, 32], strides = [1, 1]} : vector<2x128xf32> to vector<2x32xf32>
    %264 = vector.extract_strided_slice %261 {offsets = [0, 64], sizes = [2, 32], strides = [1, 1]} : vector<2x128xf32> to vector<2x32xf32>
    %cst_61 = arith.constant 2.000000e+00 : f32
    %265 = vector.broadcast %cst_61 : f32 to vector<2x32xf32>
    %266 = arith.mulf %265, %264 : vector<2x32xf32>
    %cst_62 = arith.constant 1.000000e+00 : f32
    %267 = vector.broadcast %cst_62 : f32 to vector<2x32xf32>
    %268 = arith.subf %266, %267 : vector<2x32xf32>
    %269 = vector.extract_strided_slice %261 {offsets = [0, 96], sizes = [2, 32], strides = [1, 1]} : vector<2x128xf32> to vector<2x32xf32>
    %270 = arith.mulf %263, %229 : vector<2x32xf32>
    %271 = arith.mulf %262, %268 : vector<2x32xf32>
    %272 = arith.addf %270, %271 : vector<2x32xf32>
    %273 = math.tanh %272 : vector<2x32xf32>
    %274 = arith.mulf %269, %273 : vector<2x32xf32>
    %275 = vector.extract_strided_slice %13 {offsets = [12, 0], sizes = [2, 128], strides = [1, 1]} : vector<16x128xf32> to vector<2x128xf32>
    %cst_63 = arith.constant dense<0.000000e+00> : vector<2x128xf32>
    %276 = tpu.matmul %252, %9, %cst_63 {dimension_numbers = #tpu.dot_dimension_numbers<[1], [0], [0], [1], [0, 0, 1, 1], [], []>} : vector<2x32xf32>, vector<32x128xf32>, vector<2x128xf32> -> vector<2x128xf32>
    %277 = arith.addf %275, %276 : vector<2x128xf32>
    %278 = arith.negf %277 : vector<2x128xf32>
    %279 = math.exp %278 : vector<2x128xf32>
    %cst_64 = arith.constant 1.000000e+00 : f32
    %280 = vector.broadcast %cst_64 : f32 to vector<2x128xf32>
    %281 = arith.addf %280, %279 : vector<2x128xf32>
    %282 = arith.divf %280, %281 : vector<2x128xf32>
    %283 = vector.extract_strided_slice %282 {offsets = [0, 0], sizes = [2, 32], strides = [1, 1]} : vector<2x128xf32> to vector<2x32xf32>
    %284 = vector.extract_strided_slice %282 {offsets = [0, 32], sizes = [2, 32], strides = [1, 1]} : vector<2x128xf32> to vector<2x32xf32>
    %285 = vector.extract_strided_slice %282 {offsets = [0, 64], sizes = [2, 32], strides = [1, 1]} : vector<2x128xf32> to vector<2x32xf32>
    %cst_65 = arith.constant 2.000000e+00 : f32
    %286 = vector.broadcast %cst_65 : f32 to vector<2x32xf32>
    %287 = arith.mulf %286, %285 : vector<2x32xf32>
    %cst_66 = arith.constant 1.000000e+00 : f32
    %288 = vector.broadcast %cst_66 : f32 to vector<2x32xf32>
    %289 = arith.subf %287, %288 : vector<2x32xf32>
    %290 = vector.extract_strided_slice %282 {offsets = [0, 96], sizes = [2, 32], strides = [1, 1]} : vector<2x128xf32> to vector<2x32xf32>
    %291 = arith.mulf %284, %250 : vector<2x32xf32>
    %292 = arith.mulf %283, %289 : vector<2x32xf32>
    %293 = arith.addf %291, %292 : vector<2x32xf32>
    %294 = math.tanh %293 : vector<2x32xf32>
    %295 = arith.mulf %290, %294 : vector<2x32xf32>
    %296 = tpu.concatenate %295, %274 in 1 : vector<2x32xf32>, vector<2x32xf32> -> vector<2x64xf32>
    %cst_67 = arith.constant dense<0.000000e+00> : vector<2x128xf32>
    %297 = tpu.matmul %296, %14, %cst_67 {dimension_numbers = #tpu.dot_dimension_numbers<[1], [0], [0], [1], [0, 0, 1, 1], [], []>} : vector<2x64xf32>, vector<64x128xf32>, vector<2x128xf32> -> vector<2x128xf32>
    %298 = vector.broadcast %15 : vector<1x128xf32> to vector<2x128xf32>
    %299 = arith.addf %297, %298 : vector<2x128xf32>
    %300 = arith.negf %299 : vector<2x128xf32>
    %301 = math.exp %300 : vector<2x128xf32>
    %cst_68 = arith.constant 1.000000e+00 : f32
    %302 = vector.broadcast %cst_68 : f32 to vector<2x128xf32>
    %303 = arith.addf %302, %301 : vector<2x128xf32>
    %304 = arith.divf %302, %303 : vector<2x128xf32>
    %305 = vector.extract_strided_slice %304 {offsets = [0, 0], sizes = [2, 32], strides = [1, 1]} : vector<2x128xf32> to vector<2x32xf32>
    %306 = vector.extract_strided_slice %304 {offsets = [0, 32], sizes = [2, 32], strides = [1, 1]} : vector<2x128xf32> to vector<2x32xf32>
    %307 = vector.extract_strided_slice %304 {offsets = [0, 64], sizes = [2, 32], strides = [1, 1]} : vector<2x128xf32> to vector<2x32xf32>
    %cst_69 = arith.constant 2.000000e+00 : f32
    %308 = vector.broadcast %cst_69 : f32 to vector<2x32xf32>
    %309 = arith.mulf %308, %307 : vector<2x32xf32>
    %cst_70 = arith.constant 1.000000e+00 : f32
    %310 = vector.broadcast %cst_70 : f32 to vector<2x32xf32>
    %311 = arith.subf %309, %310 : vector<2x32xf32>
    %312 = vector.extract_strided_slice %304 {offsets = [0, 96], sizes = [2, 32], strides = [1, 1]} : vector<2x128xf32> to vector<2x32xf32>
    %313 = arith.mulf %306, %272 : vector<2x32xf32>
    %314 = arith.mulf %305, %311 : vector<2x32xf32>
    %315 = arith.addf %313, %314 : vector<2x32xf32>
    %316 = math.tanh %315 : vector<2x32xf32>
    %317 = arith.mulf %312, %316 : vector<2x32xf32>
    %318 = vector.extract_strided_slice %13 {offsets = [14, 0], sizes = [2, 128], strides = [1, 1]} : vector<16x128xf32> to vector<2x128xf32>
    %cst_71 = arith.constant dense<0.000000e+00> : vector<2x128xf32>
    %319 = tpu.matmul %295, %9, %cst_71 {dimension_numbers = #tpu.dot_dimension_numbers<[1], [0], [0], [1], [0, 0, 1, 1], [], []>} : vector<2x32xf32>, vector<32x128xf32>, vector<2x128xf32> -> vector<2x128xf32>
    %320 = arith.addf %318, %319 : vector<2x128xf32>
    %321 = arith.negf %320 : vector<2x128xf32>
    %322 = math.exp %321 : vector<2x128xf32>
    %cst_72 = arith.constant 1.000000e+00 : f32
    %323 = vector.broadcast %cst_72 : f32 to vector<2x128xf32>
    %324 = arith.addf %323, %322 : vector<2x128xf32>
    %325 = arith.divf %323, %324 : vector<2x128xf32>
    %326 = vector.extract_strided_slice %325 {offsets = [0, 0], sizes = [2, 32], strides = [1, 1]} : vector<2x128xf32> to vector<2x32xf32>
    %327 = vector.extract_strided_slice %325 {offsets = [0, 32], sizes = [2, 32], strides = [1, 1]} : vector<2x128xf32> to vector<2x32xf32>
    %328 = vector.extract_strided_slice %325 {offsets = [0, 64], sizes = [2, 32], strides = [1, 1]} : vector<2x128xf32> to vector<2x32xf32>
    %cst_73 = arith.constant 2.000000e+00 : f32
    %329 = vector.broadcast %cst_73 : f32 to vector<2x32xf32>
    %330 = arith.mulf %329, %328 : vector<2x32xf32>
    %cst_74 = arith.constant 1.000000e+00 : f32
    %331 = vector.broadcast %cst_74 : f32 to vector<2x32xf32>
    %332 = arith.subf %330, %331 : vector<2x32xf32>
    %333 = vector.extract_strided_slice %325 {offsets = [0, 96], sizes = [2, 32], strides = [1, 1]} : vector<2x128xf32> to vector<2x32xf32>
    %334 = arith.mulf %327, %293 : vector<2x32xf32>
    %335 = arith.mulf %326, %332 : vector<2x32xf32>
    %336 = arith.addf %334, %335 : vector<2x32xf32>
    %337 = math.tanh %336 : vector<2x32xf32>
    %338 = arith.mulf %333, %337 : vector<2x32xf32>
    %339 = tpu.concatenate %338, %317 in 1 : vector<2x32xf32>, vector<2x32xf32> -> vector<2x64xf32>
    %cst_75 = arith.constant dense<0.000000e+00> : vector<2x128xf32>
    %340 = tpu.matmul %339, %14, %cst_75 {dimension_numbers = #tpu.dot_dimension_numbers<[1], [0], [0], [1], [0, 0, 1, 1], [], []>} : vector<2x64xf32>, vector<64x128xf32>, vector<2x128xf32> -> vector<2x128xf32>
    %341 = vector.broadcast %15 : vector<1x128xf32> to vector<2x128xf32>
    %342 = arith.addf %340, %341 : vector<2x128xf32>
    %343 = arith.negf %342 : vector<2x128xf32>
    %344 = math.exp %343 : vector<2x128xf32>
    %cst_76 = arith.constant 1.000000e+00 : f32
    %345 = vector.broadcast %cst_76 : f32 to vector<2x128xf32>
    %346 = arith.addf %345, %344 : vector<2x128xf32>
    %347 = arith.divf %345, %346 : vector<2x128xf32>
    %348 = vector.extract_strided_slice %347 {offsets = [0, 0], sizes = [2, 32], strides = [1, 1]} : vector<2x128xf32> to vector<2x32xf32>
    %349 = vector.extract_strided_slice %347 {offsets = [0, 32], sizes = [2, 32], strides = [1, 1]} : vector<2x128xf32> to vector<2x32xf32>
    %350 = vector.extract_strided_slice %347 {offsets = [0, 64], sizes = [2, 32], strides = [1, 1]} : vector<2x128xf32> to vector<2x32xf32>
    %cst_77 = arith.constant 2.000000e+00 : f32
    %351 = vector.broadcast %cst_77 : f32 to vector<2x32xf32>
    %352 = arith.mulf %351, %350 : vector<2x32xf32>
    %cst_78 = arith.constant 1.000000e+00 : f32
    %353 = vector.broadcast %cst_78 : f32 to vector<2x32xf32>
    %354 = arith.subf %352, %353 : vector<2x32xf32>
    %355 = vector.extract_strided_slice %347 {offsets = [0, 96], sizes = [2, 32], strides = [1, 1]} : vector<2x128xf32> to vector<2x32xf32>
    %356 = arith.mulf %349, %315 : vector<2x32xf32>
    %357 = arith.mulf %348, %354 : vector<2x32xf32>
    %358 = arith.addf %356, %357 : vector<2x32xf32>
    %359 = math.tanh %358 : vector<2x32xf32>
    %360 = arith.mulf %355, %359 : vector<2x32xf32>
    %c0_79 = arith.constant 0 : index
    %c0_80 = arith.constant 0 : index
    %361 = vector.load %arg7[%c0_79, %c0_80] : memref<32x2xf32, #tpu.memory_space<vmem>>, vector<32x2xf32>
    %cst_81 = arith.constant dense<0.000000e+00> : vector<2x2xf32>
    %362 = tpu.matmul %360, %361, %cst_81 {dimension_numbers = #tpu.dot_dimension_numbers<[1], [0], [0], [1], [0, 0, 1, 1], [], []>} : vector<2x32xf32>, vector<32x2xf32>, vector<2x2xf32> -> vector<2x2xf32>
    %c0_82 = arith.constant 0 : index
    %c0_83 = arith.constant 0 : index
    %363 = vector.load %arg8[%c0_82, %c0_83] : memref<1x2xf32, #tpu.memory_space<vmem>>, vector<1x2xf32>
    %364 = vector.broadcast %363 : vector<1x2xf32> to vector<2x2xf32>
    %365 = arith.addf %362, %364 : vector<2x2xf32>
    %c0_84 = arith.constant 0 : index
    %c0_85 = arith.constant 0 : index
    %366 = vector.load %arg9[%c0_84, %c0_85] : memref<2x2xf32, #tpu.memory_space<vmem>>, vector<2x2xf32>
    tpu.vector_store %arg9[%c0_84, %c0_85], %365 {strides = array<i32>} : memref<2x2xf32, #tpu.memory_space<vmem>>, vector<2x2xf32>,
    return
  }
}

</mosaic_0001>

<bundles_post_ra>
// kernel: tpu_custom_call.1
= control target key start
LH: loop header
LB: loop body
LE: loop exit
PB: predicated region body
PF: predicated region fallthrough
CT: control target
= control target key end

     0   :  { %14 = vsyncpa [#allocation3], 0  ;;  %s3500_s0 = inlined_call_operand.vmem [shape: s32[16,1], index: 0, kind: input, shape index: {}]   ;;  %s3501_s1 = inlined_call_operand.hbm [shape: f32[50,128], index: 1, kind: input, shape index: {}]   ;;  %s3502_s2 = inlined_call_operand.hbm [shape: f32[128,128], index: 2, kind: input, shape index: {}]   ;;  %s3503_s3 = inlined_call_operand.hbm [shape: f32[32,128], index: 3, kind: input, shape index: {}]   ;;  %s3504_s4 = inlined_call_operand.vmem [shape: f32[1,128], index: 4, kind: input, shape index: {}]   ;;  %s3505_s5 = inlined_call_operand.vmem [shape: f32[64,128], index: 5, kind: input, shape index: {}]   ;;  %s3506_s6 = inlined_call_operand.vmem [shape: f32[1,128], index: 6, kind: input, shape index: {}]   ;;  %s3507_s7 = inlined_call_operand.vmem [shape: f32[32,2], index: 7, kind: input, shape index: {}]   ;;  %s3508_s8 = inlined_call_operand.vmem [shape: f32[1,2], index: 8, kind: input, shape index: {}]   ;;  %s3509_s9 = inlined_call_operand.hbm [shape: f32[2,2], index: 9, kind: output, shape index: {}]  }
   0x1   :  { %15 = vsyncpa [#allocation6], 0 }
   0x2   :  { %16 = vsyncpa [#allocation4], 0  ;;  %s3009_s30 = smov [#allocation5]   ;;  %s3010_s11 = smov [#allocation2]  }
   0x3   :  { %s36_s10 = sshll.u32 %s3009_s30, 4  ;;  %s24_s12 = sshll.u32 %s3010_s11, 4  ;;  %s37_s10 = int_to_ptr.vmem [resolvable:$true] %s36_s10  ;;  %s3071_s12 = int_to_ptr.vmem [resolvable:$true] %s24_s12 }
   0x4   :  { %s2915_s15 = scalar_lea.hbm %s3502_s2, 2048 }
   0x5   :  { %p2916_p0 = scmp.ne.s32.totalorder %s3502_s2, %s2915_s15  ;;  %p2919_p1 = scmp.lt.u32.totalorder %s2915_s15, %s3502_s2 }
   0x7   :  { %p2921_p2 = pnand %p2919_p1, %p2916_p0 }
   0x9   :  { %2924 = shalt.err (!%p2921_p2)
}
   0xa   :  { %s2925_s20 = scalar_lea.vmem %s37_s10, 2048  ;;  %p2930_p4 = scmp.lt.s32.totalorder %s37_s10, %s37_s10 }
   0xb   :  { %p2926_p3 = scmp.ne.s32.totalorder %s37_s10, %s2925_s20  ;;  %p2931_p5 = scmp.lt.s32.totalorder %s2925_s20, %s2925_s20 }
   0xd   :  { %p2932_p6 = por %p2931_p5, %p2930_p4 }
   0xf   :  { %p2933_p7 = pnand %p2932_p6, %p2926_p3 }
  0x11   :  { %2936 = shalt.err (!%p2933_p7)
}
  0x12   :  { %s3011_s21 = smov 128   ;;  %s3012_s22 = smov 8  }
  0x13   :  { %42 = dma.hbm_to_vmem [thread:$0]  %s3502_s2, 2048, %s37_s10, [#allocation6], %s3011_s21, %s3011_s21, %s3012_s22  }
  0x14   :  { %s2937_s27 = scalar_lea.hbm %s3501_s1, 896 }
  0x15   :  { %p2938_p8 = scmp.ne.s32.totalorder %s3501_s1, %s2937_s27  ;;  %p2941_p9 = scmp.lt.u32.totalorder %s2937_s27, %s3501_s1 }
  0x17   :  { %p2943_p10 = pnand %p2941_p9, %p2938_p8 }
  0x19   :  { %2946 = shalt.err (!%p2943_p10)
}
  0x1a   :  { %s2947_s13 = scalar_lea.vmem %s3071_s12, 896  ;;  %p2952_p12 = scmp.lt.s32.totalorder %s3071_s12, %s3071_s12 }
  0x1b   :  { %p2948_p11 = scmp.ne.s32.totalorder %s3071_s12, %s2947_s13  ;;  %p2953_p13 = scmp.lt.s32.totalorder %s2947_s13, %s2947_s13 }
  0x1d   :  { %p2954_p0 = por %p2953_p13, %p2952_p12 }
  0x1f   :  { %p2955_p1 = pnand %p2954_p0, %p2948_p11 }
  0x21   :  { %2958 = shalt.err (!%p2955_p1)
}
  0x22   :  { %30 = dma.hbm_to_vmem [thread:$0]  %s3501_s1, 896, %s3071_s12, [#allocation3], %s3011_s21, %s3011_s21, %s3012_s22  }
  0x23   :  { %s3013_s14 = smov [#allocation7]   ;;  %s2959_s18 = scalar_lea.hbm %s3503_s3, 512 }
  0x24   :  { %s48_s15 = sshll.u32 %s3013_s14, 4  ;;  %p2960_p2 = scmp.ne.s32.totalorder %s3503_s3, %s2959_s18  ;;  %s49_s15 = int_to_ptr.vmem [resolvable:$true] %s48_s15 }
  0x25   :  { %p2963_p3 = scmp.lt.u32.totalorder %s2959_s18, %s3503_s3 }
  0x27   :  { %p2965_p4 = pnand %p2963_p3, %p2960_p2 }
  0x29   :  { %2968 = shalt.err (!%p2965_p4)
}
  0x2a   :  { %s2969_s25 = scalar_lea.vmem %s49_s15, 512  ;;  %p2974_p6 = scmp.lt.s32.totalorder %s49_s15, %s49_s15 }
  0x2b   :  { %p2970_p5 = scmp.ne.s32.totalorder %s49_s15, %s2969_s25  ;;  %p2975_p7 = scmp.lt.s32.totalorder %s2969_s25, %s2969_s25 }
  0x2d   :  { %p2976_p8 = por %p2975_p7, %p2974_p6 }
  0x2f   :  { %p2977_p9 = pnand %p2976_p8, %p2970_p5 }
  0x31   :  { %2980 = shalt.err (!%p2977_p9)
}
  0x32   :  { %54 = dma.hbm_to_vmem [thread:$0]  %s3503_s3, 512, %s49_s15, [#allocation6], %s3011_s21, %s3011_s21, %s3012_s22  }
  0x33   :  { %3003 = dma.done.wait [#allocation3], 896  }
  0x34   :  { %3004 = vsyncadd [#allocation3], 4294966400 }
  0x35   :  { %3005 = dma.done.wait [#allocation6], 2560  }
  0x36   :  { %3006 = vsyncadd [#allocation6], 4294964736  ;;  %v3014_v0 = vmov 0   ;;  %v74_v1 = vld [vmem:[%s3500_s0] sm:$0xff]  ;;  %v90_v2 = vld [vmem:[#allocation2] sm:$0xff]  ;;  %vm104_vm0 = vcmask 1041408   ;;  %v76_v38 = vlaneseq }
  0x37   :  { %2818 = vset.pattern.permute.xlu0 %v3014_v0  ;;  %v91_v3 = vld [vmem:[#allocation2 + $0x8] sm:$0xff]  ;;  %v92_v4 = vld [vmem:[#allocation2 + $0x10] sm:$0xff]  ;;  %v93_v5 = vld [vmem:[#allocation2 + $0x18] sm:$0xff]  ;;  %v3015_v27 = vmov 0.0|0.0   ;;  %vm97_vm1 = vcmask 408576   ;;  %v3016_v43 = vmov 0.0  }
  0x38   :  { %79 = vperm.xlu0 %2818, %v74_v1   ;;  %v75_v6 = vld [vmem:[%s3500_s0 + $0x8] sm:$0xff]  ;;  %v2612_v7 = vpack.c.bf16 %v91_v3, %v90_v2  ;;  %v2616_v8 = vpack.c.bf16 %v93_v5, %v92_v4  ;;  %v95_v10 = vld [vmem:[#allocation2 + $0x28] sm:$0xff]  ;;  %v183_v12 = vld [vmem:[#allocation5] sm:$0xff]  ;;  %v77_v39 = vand.u32 127, %v76_v38  ;;  %vm3017_vm4 = vmmov 0   ;;  %s3018_s21 = smov 64  }
  0x39   :  { %v94_v9 = vld [vmem:[#allocation2 + $0x20] sm:$0xff]  ;;  %v185_v14 = vld [vmem:[#allocation5 + $0x10] sm:$0xff]  ;;  %v186_v16 = vld [vmem:[#allocation5 + $0x18] sm:$0xff]  ;;  %vm294_vm5 = vcmask 261120   ;;  %vm405_vm6 = vcmask 523264   ;;  %vm2091_vm7 = vcmask 9216  }
  0x3a   :  { %2613 = vmatprep.subr.bf16.mxu0 %v2612_v7  ;;  %v2620_v11 = vpack.c.bf16 %v95_v10, %v94_v9  ;;  %v184_v13 = vld [vmem:[#allocation5 + $0x8] sm:$0xff]  ;;  %v2628_v17 = vpack.c.bf16 %v186_v16, %v185_v14  ;;  %v187_v18 = vld [vmem:[#allocation5 + $0x20] sm:$0xff]  ;;  %v96_v20 = vld [vmem:[#allocation2 + $0x30] sm:$0x3] }
  0x3b   :  { %2615 = vmatpush3.bf16.msra.mxu0 %v2612_v7  ;;  %v2624_v15 = vpack.c.bf16 %v184_v13, %v183_v12  ;;  %v188_v19 = vld [vmem:[#allocation5 + $0x28] sm:$0xff]  ;;  %v189_v22 = vld [vmem:[#allocation5 + $0x30] sm:$0xff]  ;;  %v190_v23 = vld [vmem:[#allocation5 + $0x38] sm:$0xff] }
  0x3c   :  { %82 = vperm.xlu0 %2818, %v75_v6   ;;  %2617 = vmatprep.subr.bf16.mxu0 %v2616_v8  ;;  %v2632_v21 = vpack.c.bf16 %v188_v19, %v187_v18  ;;  %v2636_v24 = vpack.c.bf16 %v190_v23, %v189_v22  ;;  %v191_v25 = vld [vmem:[#allocation5 + $0x40] sm:$0xff]  ;;  %v192_v26 = vld [vmem:[#allocation5 + $0x48] sm:$0xff]  ;;  %v193_v29 = vld [vmem:[#allocation5 + $0x50] sm:$0xff] }
  0x3d   :  { %2625 = vmatprep.subr.bf16.mxu1 %v2624_v15  ;;  %v2640_v28 = vpack.c.bf16 %v192_v26, %v191_v25  ;;  %v194_v30 = vld [vmem:[#allocation5 + $0x58] sm:$0xff]  ;;  %v195_v32 = vld [vmem:[#allocation5 + $0x60] sm:$0xff]  ;;  %v196_v33 = vld [vmem:[#allocation5 + $0x68] sm:$0xff] }
  0x3e   :  { %2627 = vmatpush3.bf16.msra.mxu1 %v2624_v15  ;;  %v2644_v31 = vpack.c.bf16 %v194_v30, %v193_v29  ;;  %v2648_v34 = vpack.c.bf16 %v196_v33, %v195_v32  ;;  %v197_v35 = vld [vmem:[#allocation5 + $0x70] sm:$0xff]  ;;  %v198_v36 = vld [vmem:[#allocation5 + $0x78] sm:$0xff]  ;;  %v199_v41 = vld [vmem:[#allocation7] sm:$0xff] }
  0x3f   :  { %2619 = vmatpush3.bf16.msra.mxu0 %v2616_v8  ;;  %2629 = vmatprep.subr.bf16.mxu1 %v2628_v17  ;;  %v2652_v37 = vpack.c.bf16 %v198_v36, %v197_v35  ;;  %v200_v42 = vld [vmem:[#allocation7 + $0x8] sm:$0xff]  ;;  %v201_v48 = vld [vmem:[#allocation7 + $0x10] sm:$0xff]  ;;  %v202_v49 = vld [vmem:[#allocation7 + $0x18] sm:$0xff] }
  0x40   :  { %2621 = vmatprep.subr.bf16.mxu0 %v2620_v11  ;;  %v3132_v46 = vpack.c.bf16 %v200_v42, %v199_v41  ;;  %v3137_v50 = vpack.c.bf16 %v202_v49, %v201_v48  ;;  %v2114_v55 = vld [vmem:[%s3504_s4] ss:$0 sm:$0xff]  ;;  %s3019_s4 = smov 32   ;;  %v286_v9 = vld [vmem:[%s3505_s5 + $0x8] sm:$0xff]  ;;  %v287_v10 = vld [vmem:[%s3505_s5 + $0x10] sm:$0xff] }
  0x41   :  { %v285_v8 = vld [vmem:[%s3505_s5] sm:$0xff]  ;;  %v288_v12 = vld [vmem:[%s3505_s5 + $0x18] sm:$0xff]  ;;  %v290_v15 = vld [vmem:[%s3505_s5 + $0x28] sm:$0xff] }
  0x42   :  { %2631 = vmatpush3.bf16.msra.mxu1 %v2628_v17  ;;  %v3180_v13 = vpack.c.bf16 %v288_v12, %v287_v10  ;;  %v289_v14 = vld [vmem:[%s3505_s5 + $0x20] sm:$0xff]  ;;  %v291_v17 = vld [vmem:[%s3505_s5 + $0x30] sm:$0xff]  ;;  %v292_v18 = vld [vmem:[%s3505_s5 + $0x38] sm:$0xff] }
  0x43   :  { %2623 = vmatpush3.bf16.msra.mxu0 %v2620_v11  ;;  %2633 = vmatprep.subr.bf16.mxu1 %v2632_v21  ;;  %v3174_v11 = vpack.c.bf16 %v286_v9, %v285_v8  ;;  %v3190_v16 = vpack.c.bf16 %v290_v15, %v289_v14  ;;  %v3229_v25 = vld [vmem:[%s3506_s6] ss:$0 sm:$0xff] }
  0x44   :  { %2321 = vmatprep.subr.msk.mxu0 %vm104_vm0, %v96_v20 }
  0x46   :  { %2635 = vmatpush3.bf16.msra.mxu1 %v2632_v21 }
  0x47   :  { %2322 = vmatpush3.msk.msra.mxu0 %vm104_vm0, %v96_v20  ;;  %2637 = vmatprep.subr.bf16.mxu1 %v2636_v24  ;;  %v3201_v20 = vpack.c.bf16 %v292_v18, %v291_v17 }
  0x48   :  { %2656 = vmatprep.subr.bf16.mxu0 %v3015_v27 }
  0x4a   :  { %2639 = vmatpush3.bf16.msra.mxu1 %v2636_v24 }
  0x4b   :  { %2641 = vmatprep.subr.bf16.mxu1 %v2640_v28 }
  0x4e   :  { %2643 = vmatpush3.bf16.msra.mxu1 %v2640_v28 }
  0x4f   :  { %2645 = vmatprep.subr.bf16.mxu1 %v2644_v31 }
  0x52   :  { %2647 = vmatpush3.bf16.msra.mxu1 %v2644_v31 }
  0x53   :  { %2649 = vmatprep.subr.bf16.mxu1 %v2648_v34 }
  0x56   :  { %2651 = vmatpush3.bf16.msra.mxu1 %v2648_v34 }
  0x57   :  { %2653 = vmatprep.subr.bf16.mxu1 %v2652_v37 }
  0x5a   :  { %2655 = vmatpush3.bf16.msra.mxu1 %v2652_v37 }
  0x5b   :  { %2674 = vmatprep.subr.bf16.mxu1 %v3015_v27 }
  0xb7   :  { %v80_v40 = vpop.permute.xlu0 %79 }
  0xb8   :  { %vm84_vm2 = vcmp.eq.s32.totalorder %v77_v39, %v80_v40 }
  0xb9   :  { %v2109_v44 = vsel %vm84_vm2, 1.0, %v3016_v43 }
  0xba   :  { %2323 = vmatprep.mubr.msk.f32.mxu0 %vm97_vm1, %v2109_v44 }
  0xbb   :  { %v83_v45 = vpop.permute.xlu0 %82 }
  0xbc   :  { %vm85_vm3 = vcmp.eq.s32.totalorder %v77_v39, %v83_v45 }
  0xbd   :  { %v2110_v47 = vsel %vm85_vm3, 1.0, %v3016_v43 }
  0xbe   :  { %2324 = vmatmul.mubr.msk.f32.vlgmr.msra.gmra.mrb[0].mxu0 %vm97_vm1, %v2110_v47 }
  0xbf   :  { %2658 = vmatpush3.bf16.msra.mxu0 %v3132_v46  ;;  %2369 = vmatprep.mubr.msk.f32.mxu0 %vm3017_vm4, %v3016_v43 }
  0xc0   :  { %2659 = vmatprep.subr.bf16.mxu0 %v3015_v27 }
  0xc3   :  { %2661 = vmatpush3.bf16.msra.mxu0 %v3137_v50 }
  0xc4   :  { %2662 = vmatprep.subr.bf16.mxu0 %v3015_v27 }
  0xc6   :  { %2370 = vmatmul.mubr.f32.vlgmr.msra.gmra.mrb[2].mxu0 %v3016_v43 }
  0xc7   :  { %2388 = vmatprep.mubr.msk.f32.mxu0 %vm3017_vm4, %v3016_v43  ;;  %2664 = vmatpush3.bf16.msra.mxu0 %v3174_v11 }
  0xc8   :  { %2665 = vmatprep.subr.bf16.mxu0 %v3015_v27 }
  0xcb   :  { %2667 = vmatpush3.bf16.msra.mxu0 %v3180_v13 }
  0xcc   :  { %2668 = vmatprep.subr.bf16.mxu0 %v3015_v27 }
  0xcf   :  { %2670 = vmatpush3.bf16.msra.mxu0 %v3190_v16 }
  0xd0   :  { %2671 = vmatprep.subr.bf16.mxu0 %v3015_v27 }
  0xd3   :  { %2673 = vmatpush3.bf16.msra.mxu0 %v3201_v20 }
  0xd4   :  { %2680 = vmatprep.subr.bf16.mxu0 %v3015_v27 }
 0x191   :  { %v2325_v51 = vpop.f32.mrb[0].mxu0 }
 0x192   :  { %v174_v52 = vpop.f32.mrb[1].mxu0 }
 0x193   :  { %2358 = vmatprep.mubr.f32.mxu1 %v174_v52 }
 0x194   :  { %2359 = vmatmul.mubr.f32.vlgmr.msra.gmra.mrb[0].mxu1 %v2325_v51 }
 0x195   :  { %2676 = vmatpush3.bf16.msra.mxu1 %v3132_v46  ;;  %2399 = vmatprep.mubr.msk.f32.mxu1 %vm3017_vm4, %v3016_v43 }
 0x196   :  { %2677 = vmatprep.subr.bf16.mxu1 %v3015_v27 }
 0x199   :  { %2679 = vmatpush3.bf16.msra.mxu1 %v3137_v50  ;;  %v364_v53 = vpop.f32.mrb[2].mxu0 }
 0x19a   :  { %2692 = vmatprep.subr.bf16.mxu1 %v3015_v27  ;;  %v2371_v54 = vpop.f32.mrb[3].mxu0 }
 0x267   :  { %v2360_v56 = vpop.f32.mrb[0].mxu1 }
 0x268   :  { %v3155_v57 = vadd.f32 %v2360_v56, %v2114_v55  ;;  %v276_v58 = vpop.f32.mrb[1].mxu1 }
 0x269   :  { %v3157_v59 = vadd.f32 %v2114_v55, %v276_v58 }
 0x26b   :  { %v368_v60 = vadd.f32 %v364_v53, %v3157_v59 }
 0x26d   :  { %v2115_v61 = vmul.f32 -1.442695, %v368_v60 }
 0x26f   :  { %2819 = vpow2.f32 %v2115_v61 }
 0x279   :  { %v2820_v62 = vpop.eup %2819 }
 0x27a   :  { %v372_v63 = vadd.f32 1.0, %v2820_v62 }
 0x27c   :  { %2821 = vrcp.f32 %v372_v63 }
 0x286   :  { %v2822_v0 = vpop.eup %2821 }
 0x287   :  { %v375_v1 = vmul.f32 2.0, %v2822_v0  ;;  %v377_v5 = vmul.f32 0.0, %v2822_v0 }
 0x289   :  { %v2116_v2 = vadd.f32 -1.0, %v375_v1 }
 0x28b   :  { %379 = vrot.lane.b32.xlu1 %v2116_v2, %s3018_s21 }
 0x2fd   :  { %v380_v3 = vpop.permute.xlu1 %379 }
 0x2fe   :  { %v382_v4 = vmul.f32 %v2822_v0, %v380_v3 }
 0x300   :  { %384 = vrot.lane.b32.xlu1 %v382_v4, %s3019_s4 }
 0x372   :  { %v385_v6 = vpop.permute.xlu1 %384 }
 0x373   :  { %v3162_v7 = vadd.f32 %v385_v6, %v377_v5 }
 0x375   :  { %2823 = vtanh.f32 %v3162_v7  ;;  %v589_v53 = vrot.slane %v3162_v7, 6 }
 0x37f   :  { %v2824_v19 = vpop.eup %2823 }
 0x380   :  { %390 = vrot.lane.b32.xlu0 %v2824_v19, %s3018_s21 }
 0x3f2   :  { %v391_v21 = vpop.permute.xlu0 %390 }
 0x3f3   :  { %v393_v22 = vmul.f32 %v2822_v0, %v391_v21 }
 0x3f5   :  { %395 = vrot.lane.b32.xlu1 %v393_v22, %s3019_s4 }
 0x467   :  { %v396_v23 = vpop.permute.xlu1 %395 }
 0x468   :  { %v398_v24 = vsel %vm294_vm5, %v396_v23, 0.0  ;;  %2400 = vmatmul.mubr.msk.f32.vlgmr.msra.gmra.mrb[2].mxu1 %vm294_vm5, %v396_v23 }
 0x469   :  { %2389 = vmatmul.mubr.msk.f32.vlgmr.msra.gmra.mrb[4].mxu0 %vm405_vm6, %v398_v24  ;;  %2694 = vmatpush3.bf16.msra.mxu1 %v3132_v46 }
 0x46a   :  { %2682 = vmatpush3.bf16.msra.mxu0 %v3174_v11  ;;  %2695 = vmatprep.subr.bf16.mxu1 %v3015_v27 }
 0x46b   :  { %2683 = vmatprep.subr.bf16.mxu0 %v3015_v27  ;;  %2418 = vmatprep.mubr.msk.f32.mxu0 %vm3017_vm4, %v3016_v43 }
 0x46c   :  { %2429 = vmatprep.mubr.msk.f32.mxu1 %vm3017_vm4, %v3016_v43 }
 0x46d   :  { %2697 = vmatpush3.bf16.msra.mxu1 %v3137_v50 }
 0x46e   :  { %2685 = vmatpush3.bf16.msra.mxu0 %v3180_v13  ;;  %2698 = vmatprep.subr.bf16.mxu1 %v3015_v27 }
 0x46f   :  { %2686 = vmatprep.subr.bf16.mxu0 %v3015_v27 }
 0x472   :  { %2688 = vmatpush3.bf16.msra.mxu0 %v3190_v16 }
 0x473   :  { %2689 = vmatprep.subr.bf16.mxu0 %v3015_v27 }
 0x476   :  { %2691 = vmatpush3.bf16.msra.mxu0 %v3201_v20 }
 0x477   :  { %2710 = vmatprep.subr.bf16.mxu0 %v3015_v27 }
 0x53b   :  { %v572_v26 = vpop.f32.mrb[2].mxu1 }
 0x53c   :  { %v577_v28 = vrot.slane %v572_v26, 6  ;;  %v475_v29 = vpop.f32.mrb[4].mxu0  ;;  %v2401_v30 = vpop.f32.mrb[3].mxu1 }
 0x53d   :  { %v476_v31 = vadd.f32 %v3229_v25, %v475_v29  ;;  %v2390_v32 = vpop.f32.mrb[5].mxu0 }
 0x53e   :  { %v579_v33 = vadd.f32 %v577_v28, %v3157_v59 }
 0x53f   :  { %v2119_v34 = vmul.f32 -1.442695, %v476_v31 }
 0x540   :  { %v2122_v35 = vmul.f32 -1.442695, %v579_v33 }
 0x541   :  { %2825 = vpow2.f32 %v2119_v34 }
 0x542   :  { %2827 = vpow2.f32 %v2122_v35 }
 0x54b   :  { %v2826_v36 = vpop.eup %2825 }
 0x54c   :  { %v2828_v37 = vpop.eup %2827  ;;  %v482_v38 = vadd.f32 1.0, %v2826_v36 }
 0x54d   :  { %v583_v39 = vadd.f32 1.0, %v2828_v37 }
 0x54e   :  { %2829 = vrcp.f32 %v482_v38 }
 0x54f   :  { %2831 = vrcp.f32 %v583_v39 }
 0x558   :  { %v2830_v40 = vpop.eup %2829 }
 0x559   :  { %v2832_v41 = vpop.eup %2831  ;;  %v485_v42 = vmul.f32 2.0, %v2830_v40  ;;  %v487_v54 = vmul.f32 0.0, %v2830_v40 }
 0x55a   :  { %v586_v44 = vmul.f32 2.0, %v2832_v41  ;;  %v591_v56 = vmul.f32 %v2832_v41, %v589_v53 }
 0x55b   :  { %v2120_v45 = vadd.f32 -1.0, %v485_v42 }
 0x55c   :  { %v2123_v47 = vadd.f32 -1.0, %v586_v44 }
 0x55d   :  { %489 = vrot.lane.b32.xlu0 %v2120_v45, %s3018_s21 }
 0x55e   :  { %593 = vrot.lane.b32.xlu1 %v2123_v47, %s3018_s21 }
 0x5cf   :  { %v490_v48 = vpop.permute.xlu0 %489 }
 0x5d0   :  { %v492_v49 = vmul.f32 %v2830_v40, %v490_v48  ;;  %v594_v51 = vpop.permute.xlu1 %593 }
 0x5d1   :  { %v596_v52 = vmul.f32 %v2832_v41, %v594_v51 }
 0x5d2   :  { %494 = vrot.lane.b32.xlu0 %v492_v49, %s3019_s4 }
 0x5d3   :  { %598 = vrot.lane.b32.xlu1 %v596_v52, %s3019_s4 }
 0x644   :  { %v495_v55 = vpop.permute.xlu0 %494 }
 0x645   :  { %v3238_v58 = vadd.f32 %v495_v55, %v487_v54  ;;  %v599_v60 = vpop.permute.xlu1 %598 }
 0x646   :  { %v3240_v61 = vadd.f32 %v599_v60, %v591_v56 }
 0x647   :  { %2833 = vtanh.f32 %v3238_v58 }
 0x648   :  { %2835 = vtanh.f32 %v3240_v61 }
 0x651   :  { %v2834_v62 = vpop.eup %2833 }
 0x652   :  { %v2836_v63 = vpop.eup %2835  ;;  %500 = vrot.lane.b32.xlu0 %v2834_v62, %s3018_s21 }
 0x653   :  { %604 = vrot.lane.b32.xlu1 %v2836_v63, %s3018_s21 }
 0x6c4   :  { %v501_v0 = vpop.permute.xlu0 %500 }
 0x6c5   :  { %v503_v1 = vmul.f32 %v2830_v40, %v501_v0  ;;  %v605_v2 = vpop.permute.xlu1 %604  ;;  %v805_v40 = vrot.slane %v3240_v61, 6 }
 0x6c6   :  { %v607_v3 = vmul.f32 %v2832_v41, %v605_v2 }
 0x6c7   :  { %v613_v4 = vrot.slane %v503_v1, 6 }
 0x6c8   :  { %609 = vrot.lane.b32.xlu0 %v607_v3, %s3019_s4  ;;  %v717_v5 = vrot.slane %v607_v3, 2 }
 0x6c9   :  { %614 = vrot.lane.b32.xlu1 %v613_v4, %s3018_s21 }
 0x6cc   :  { %718 = vrot.lane.b32.xlu0 %v717_v5, %s3019_s4 }
 0x73a   :  { %v610_v6 = vpop.permute.xlu0 %609 }
 0x73b   :  { %v615_v7 = vpop.permute.xlu1 %614 }
 0x73c   :  { %v617_v8 = vsel %vm294_vm5, %v610_v6, %v615_v7 }
 0x73d   :  { %v619_v9 = vrot.slane %v617_v8, 2 }
 0x73e   :  { %v719_v10 = vpop.permute.xlu0 %718 }
 0x73f   :  { %2419 = vmatmul.mubr.msk.f32.vlgmr.msra.gmra.mrb[6].mxu0 %vm405_vm6, %v619_v9  ;;  %2430 = vmatmul.mubr.msk.f32.vlgmr.msra.gmra.mrb[4].mxu1 %vm294_vm5, %v719_v10 }
 0x740   :  { %2700 = vmatpush3.bf16.msra.mxu1 %v3174_v11  ;;  %2712 = vmatpush3.bf16.msra.mxu0 %v3132_v46 }
 0x741   :  { %2701 = vmatprep.subr.bf16.mxu1 %v3015_v27  ;;  %2713 = vmatprep.subr.bf16.mxu0 %v3015_v27 }
 0x742   :  { %2448 = vmatprep.mubr.msk.f32.mxu1 %vm3017_vm4, %v3016_v43  ;;  %2459 = vmatprep.mubr.msk.f32.mxu0 %vm3017_vm4, %v3016_v43 }
 0x744   :  { %2703 = vmatpush3.bf16.msra.mxu1 %v3180_v13  ;;  %2715 = vmatpush3.bf16.msra.mxu0 %v3137_v50 }
 0x745   :  { %2704 = vmatprep.subr.bf16.mxu1 %v3015_v27  ;;  %2716 = vmatprep.subr.bf16.mxu0 %v3015_v27 }
 0x748   :  { %2706 = vmatpush3.bf16.msra.mxu1 %v3190_v16 }
 0x749   :  { %2707 = vmatprep.subr.bf16.mxu1 %v3015_v27 }
 0x74c   :  { %2709 = vmatpush3.bf16.msra.mxu1 %v3201_v20 }
 0x74d   :  { %2728 = vmatprep.subr.bf16.mxu1 %v3015_v27 }
 0x812   :  { %v688_v12 = vpop.f32.mrb[6].mxu0  ;;  %v788_v14 = vpop.f32.mrb[4].mxu1 }
 0x813   :  { %v689_v15 = vadd.f32 %v3229_v25, %v688_v12  ;;  %v793_v17 = vrot.slane %v788_v14, 4  ;;  %v2420_v18 = vpop.f32.mrb[7].mxu0  ;;  %v2431_v19 = vpop.f32.mrb[5].mxu1 }
 0x815   :  { %v2125_v21 = vmul.f32 -1.442695, %v689_v15  ;;  %v795_v22 = vadd.f32 %v793_v17, %v3157_v59 }
 0x817   :  { %2837 = vpow2.f32 %v2125_v21  ;;  %v2128_v23 = vmul.f32 -1.442695, %v795_v22 }
 0x819   :  { %2839 = vpow2.f32 %v2128_v23 }
 0x821   :  { %v2838_v24 = vpop.eup %2837 }
 0x822   :  { %v695_v26 = vadd.f32 1.0, %v2838_v24 }
 0x823   :  { %v2840_v28 = vpop.eup %2839 }
 0x824   :  { %2841 = vrcp.f32 %v695_v26  ;;  %v799_v29 = vadd.f32 1.0, %v2840_v28 }
 0x826   :  { %2843 = vrcp.f32 %v799_v29 }
 0x82e   :  { %v2842_v30 = vpop.eup %2841 }
 0x82f   :  { %v698_v31 = vmul.f32 2.0, %v2842_v30  ;;  %v700_v41 = vmul.f32 %v2842_v30, %v3238_v58 }
 0x830   :  { %v2844_v32 = vpop.eup %2843 }
 0x831   :  { %v2126_v33 = vadd.f32 -1.0, %v698_v31  ;;  %v802_v34 = vmul.f32 2.0, %v2844_v32  ;;  %v807_v45 = vmul.f32 %v2844_v32, %v805_v40 }
 0x833   :  { %702 = vrot.lane.b32.xlu1 %v2126_v33, %s3018_s21  ;;  %v2129_v35 = vadd.f32 -1.0, %v802_v34 }
 0x835   :  { %809 = vrot.lane.b32.xlu0 %v2129_v35, %s3018_s21 }
 0x8a5   :  { %v703_v36 = vpop.permute.xlu1 %702 }
 0x8a6   :  { %v705_v37 = vmul.f32 %v2842_v30, %v703_v36 }
 0x8a7   :  { %v810_v38 = vpop.permute.xlu0 %809 }
 0x8a8   :  { %v812_v39 = vmul.f32 %v2844_v32, %v810_v38  ;;  %707 = vrot.lane.b32.xlu1 %v705_v37, %s3019_s4 }
 0x8aa   :  { %814 = vrot.lane.b32.xlu0 %v812_v39, %s3019_s4 }
 0x91a   :  { %v708_v42 = vpop.permute.xlu1 %707 }
 0x91b   :  { %v3276_v44 = vadd.f32 %v708_v42, %v700_v41 }
 0x91c   :  { %v815_v47 = vpop.permute.xlu0 %814 }
 0x91d   :  { %2845 = vtanh.f32 %v3276_v44  ;;  %v3279_v48 = vadd.f32 %v815_v47, %v807_v45 }
 0x91f   :  { %2847 = vtanh.f32 %v3279_v48 }
 0x927   :  { %v2846_v49 = vpop.eup %2845 }
 0x928   :  { %713 = vrot.lane.b32.xlu1 %v2846_v49, %s3018_s21 }
 0x929   :  { %v2848_v51 = vpop.eup %2847 }
 0x92a   :  { %820 = vrot.lane.b32.xlu0 %v2848_v51, %s3018_s21 }
 0x99a   :  { %v714_v52 = vpop.permute.xlu1 %713 }
 0x99b   :  { %v716_v53 = vmul.f32 %v2842_v30, %v714_v52  ;;  %v1021_v30 = vrot.slane %v3279_v48, 6 }
 0x99c   :  { %v821_v54 = vpop.permute.xlu0 %820 }
 0x99d   :  { %v829_v55 = vrot.slane %v716_v53, 4  ;;  %v823_v56 = vmul.f32 %v2844_v32, %v821_v54 }
 0x99f   :  { %825 = vrot.lane.b32.xlu1 %v823_v56, %s3019_s4  ;;  %830 = vrot.lane.b32.xlu0 %v829_v55, %s3018_s21  ;;  %v933_v58 = vrot.slane %v823_v56, 4 }
 0x9a3   :  { %934 = vrot.lane.b32.xlu1 %v933_v58, %s3019_s4 }
 0xa11   :  { %v831_v60 = vpop.permute.xlu0 %830  ;;  %v826_v61 = vpop.permute.xlu1 %825 }
 0xa12   :  { %v833_v62 = vsel %vm294_vm5, %v826_v61, %v831_v60 }
 0xa13   :  { %v835_v63 = vrot.slane %v833_v62, 4 }
 0xa15   :  { %2449 = vmatmul.mubr.msk.f32.vlgmr.msra.gmra.mrb[6].mxu1 %vm405_vm6, %v835_v63  ;;  %v935_v0 = vpop.permute.xlu1 %934 }
 0xa16   :  { %2460 = vmatmul.mubr.msk.f32.vlgmr.msra.gmra.mrb[8].mxu0 %vm294_vm5, %v935_v0  ;;  %2730 = vmatpush3.bf16.msra.mxu1 %v3132_v46 }
 0xa17   :  { %2718 = vmatpush3.bf16.msra.mxu0 %v3174_v11  ;;  %2731 = vmatprep.subr.bf16.mxu1 %v3015_v27 }
 0xa18   :  { %2719 = vmatprep.subr.bf16.mxu0 %v3015_v27  ;;  %2478 = vmatprep.mubr.msk.f32.mxu0 %vm3017_vm4, %v3016_v43 }
 0xa19   :  { %2489 = vmatprep.mubr.msk.f32.mxu1 %vm3017_vm4, %v3016_v43 }
 0xa1a   :  { %2733 = vmatpush3.bf16.msra.mxu1 %v3137_v50 }
 0xa1b   :  { %2721 = vmatpush3.bf16.msra.mxu0 %v3180_v13  ;;  %2734 = vmatprep.subr.bf16.mxu1 %v3015_v27 }
 0xa1c   :  { %2722 = vmatprep.subr.bf16.mxu0 %v3015_v27 }
 0xa1f   :  { %2724 = vmatpush3.bf16.msra.mxu0 %v3190_v16 }
 0xa20   :  { %2725 = vmatprep.subr.bf16.mxu0 %v3015_v27 }
 0xa23   :  { %2727 = vmatpush3.bf16.msra.mxu0 %v3201_v20 }
 0xa24   :  { %2746 = vmatprep.subr.bf16.mxu0 %v3015_v27 }
 0xae8   :  { %v904_v1 = vpop.f32.mrb[6].mxu1 }
 0xae9   :  { %v905_v2 = vadd.f32 %v3229_v25, %v904_v1  ;;  %v2450_v3 = vpop.f32.mrb[7].mxu1  ;;  %v1004_v4 = vpop.f32.mrb[8].mxu0 }
 0xaea   :  { %v1009_v5 = vrot.slane %v1004_v4, 2  ;;  %v2461_v6 = vpop.f32.mrb[9].mxu0 }
 0xaeb   :  { %v2131_v7 = vmul.f32 -1.442695, %v905_v2 }
 0xaec   :  { %v1011_v8 = vadd.f32 %v1009_v5, %v3157_v59 }
 0xaed   :  { %2849 = vpow2.f32 %v2131_v7 }
 0xaee   :  { %v2134_v9 = vmul.f32 -1.442695, %v1011_v8 }
 0xaf0   :  { %2851 = vpow2.f32 %v2134_v9 }
 0xaf7   :  { %v2850_v10 = vpop.eup %2849 }
 0xaf8   :  { %v911_v12 = vadd.f32 1.0, %v2850_v10 }
 0xafa   :  { %v2852_v14 = vpop.eup %2851  ;;  %2853 = vrcp.f32 %v911_v12 }
 0xafb   :  { %v1015_v15 = vadd.f32 1.0, %v2852_v14 }
 0xafd   :  { %2855 = vrcp.f32 %v1015_v15 }
 0xb04   :  { %v2854_v17 = vpop.eup %2853 }
 0xb05   :  { %v914_v18 = vmul.f32 2.0, %v2854_v17  ;;  %v916_v29 = vmul.f32 %v2854_v17, %v3276_v44 }
 0xb07   :  { %v2856_v19 = vpop.eup %2855  ;;  %v2132_v21 = vadd.f32 -1.0, %v914_v18 }
 0xb08   :  { %v1018_v22 = vmul.f32 2.0, %v2856_v19  ;;  %v1023_v33 = vmul.f32 %v2856_v19, %v1021_v30 }
 0xb09   :  { %918 = vrot.lane.b32.xlu0 %v2132_v21, %s3018_s21 }
 0xb0a   :  { %v2135_v23 = vadd.f32 -1.0, %v1018_v22 }
 0xb0c   :  { %1025 = vrot.lane.b32.xlu1 %v2135_v23, %s3018_s21 }
 0xb7b   :  { %v919_v59 = vpop.permute.xlu0 %918 }
 0xb7c   :  { %v921_v24 = vmul.f32 %v2854_v17, %v919_v59 }
 0xb7e   :  { %923 = vrot.lane.b32.xlu0 %v921_v24, %s3019_s4  ;;  %v1026_v26 = vpop.permute.xlu1 %1025 }
 0xb7f   :  { %v1028_v28 = vmul.f32 %v2856_v19, %v1026_v26 }
 0xb81   :  { %1030 = vrot.lane.b32.xlu1 %v1028_v28, %s3019_s4 }
 0xbf0   :  { %v924_v31 = vpop.permute.xlu0 %923 }
 0xbf1   :  { %v3314_v32 = vadd.f32 %v924_v31, %v916_v29 }
 0xbf3   :  { %2857 = vtanh.f32 %v3314_v32  ;;  %v1031_v34 = vpop.permute.xlu1 %1030 }
 0xbf4   :  { %v3317_v35 = vadd.f32 %v1031_v34, %v1023_v33 }
 0xbf6   :  { %2859 = vtanh.f32 %v3317_v35  ;;  %v1234_v14 = vrot.slane %v3317_v35, 6 }
 0xbfd   :  { %v2858_v36 = vpop.eup %2857 }
 0xbfe   :  { %929 = vrot.lane.b32.xlu0 %v2858_v36, %s3018_s21 }
 0xc00   :  { %v2860_v37 = vpop.eup %2859 }
 0xc01   :  { %1036 = vrot.lane.b32.xlu1 %v2860_v37, %s3018_s21 }
 0xc70   :  { %v930_v38 = vpop.permute.xlu0 %929 }
 0xc71   :  { %v932_v39 = vmul.f32 %v2854_v17, %v930_v38 }
 0xc73   :  { %v1045_v40 = vrot.slane %v932_v39, 2  ;;  %v1037_v41 = vpop.permute.xlu1 %1036 }
 0xc74   :  { %v1039_v42 = vmul.f32 %v2856_v19, %v1037_v41 }
 0xc75   :  { %1046 = vrot.lane.b32.xlu1 %v1045_v40, %s3018_s21 }
 0xc76   :  { %1041 = vrot.lane.b32.xlu0 %v1039_v42, %s3019_s4  ;;  %v1149_v44 = vrot.slane %v1039_v42, 6 }
 0xc7a   :  { %1150 = vrot.lane.b32.xlu0 %v1149_v44, %s3019_s4 }
 0xce7   :  { %v1047_v45 = vpop.permute.xlu1 %1046 }
 0xce8   :  { %v1042_v47 = vpop.permute.xlu0 %1041 }
 0xce9   :  { %v1049_v48 = vsel %vm294_vm5, %v1042_v47, %v1047_v45 }
 0xcea   :  { %v1051_v49 = vrot.slane %v1049_v48, 6 }
 0xcec   :  { %v1151_v51 = vpop.permute.xlu0 %1150  ;;  %2479 = vmatmul.mubr.msk.f32.vlgmr.msra.gmra.mrb[10].mxu0 %vm405_vm6, %v1051_v49 }
 0xced   :  { %2490 = vmatmul.mubr.msk.f32.vlgmr.msra.gmra.mrb[8].mxu1 %vm294_vm5, %v1151_v51  ;;  %2748 = vmatpush3.bf16.msra.mxu0 %v3132_v46 }
 0xcee   :  { %2736 = vmatpush3.bf16.msra.mxu1 %v3174_v11  ;;  %2749 = vmatprep.subr.bf16.mxu0 %v3015_v27 }
 0xcef   :  { %2737 = vmatprep.subr.bf16.mxu1 %v3015_v27  ;;  %2519 = vmatprep.mubr.msk.f32.mxu0 %vm3017_vm4, %v3016_v43 }
 0xcf0   :  { %2508 = vmatprep.mubr.msk.f32.mxu1 %vm3017_vm4, %v3016_v43 }
 0xcf1   :  { %2751 = vmatpush3.bf16.msra.mxu0 %v3137_v50 }
 0xcf2   :  { %2739 = vmatpush3.bf16.msra.mxu1 %v3180_v13  ;;  %2752 = vmatprep.subr.bf16.mxu0 %v3015_v27 }
 0xcf3   :  { %2740 = vmatprep.subr.bf16.mxu1 %v3015_v27 }
 0xcf6   :  { %2742 = vmatpush3.bf16.msra.mxu1 %v3190_v16 }
 0xcf7   :  { %2743 = vmatprep.subr.bf16.mxu1 %v3015_v27 }
 0xcfa   :  { %2745 = vmatpush3.bf16.msra.mxu1 %v3201_v20 }
 0xcfb   :  { %2764 = vmatprep.subr.bf16.mxu1 %v3015_v27 }
 0xdbf   :  { %v1120_v52 = vpop.f32.mrb[10].mxu0 }
 0xdc0   :  { %v1121_v53 = vadd.f32 %v3229_v25, %v1120_v52  ;;  %v2480_v54 = vpop.f32.mrb[11].mxu0  ;;  %v1220_v55 = vpop.f32.mrb[8].mxu1 }
 0xdc1   :  { %v1224_v56 = vadd.f32 %v1220_v55, %v3155_v57  ;;  %v2491_v58 = vpop.f32.mrb[9].mxu1 }
 0xdc2   :  { %v2137_v60 = vmul.f32 -1.442695, %v1121_v53 }
 0xdc3   :  { %v2140_v61 = vmul.f32 -1.442695, %v1224_v56 }
 0xdc4   :  { %2861 = vpow2.f32 %v2137_v60 }
 0xdc5   :  { %2863 = vpow2.f32 %v2140_v61 }
 0xdce   :  { %v2862_v62 = vpop.eup %2861 }
 0xdcf   :  { %v2864_v63 = vpop.eup %2863  ;;  %v1127_v0 = vadd.f32 1.0, %v2862_v62 }
 0xdd0   :  { %v1228_v1 = vadd.f32 1.0, %v2864_v63 }
 0xdd1   :  { %2865 = vrcp.f32 %v1127_v0 }
 0xdd2   :  { %2867 = vrcp.f32 %v1228_v1 }
 0xddb   :  { %v2866_v2 = vpop.eup %2865 }
 0xddc   :  { %v2868_v3 = vpop.eup %2867  ;;  %v1130_v4 = vmul.f32 2.0, %v2866_v2  ;;  %v1132_v15 = vmul.f32 %v2866_v2, %v3314_v32 }
 0xddd   :  { %v1231_v5 = vmul.f32 2.0, %v2868_v3  ;;  %v1236_v18 = vmul.f32 %v2868_v3, %v1234_v14 }
 0xdde   :  { %v2138_v6 = vadd.f32 -1.0, %v1130_v4 }
 0xddf   :  { %v2141_v7 = vadd.f32 -1.0, %v1231_v5 }
 0xde0   :  { %1134 = vrot.lane.b32.xlu1 %v2138_v6, %s3018_s21 }
 0xde1   :  { %1238 = vrot.lane.b32.xlu0 %v2141_v7, %s3018_s21 }
 0xe52   :  { %v1135_v8 = vpop.permute.xlu1 %1134 }
 0xe53   :  { %v1137_v9 = vmul.f32 %v2866_v2, %v1135_v8  ;;  %v1239_v10 = vpop.permute.xlu0 %1238 }
 0xe54   :  { %v1241_v12 = vmul.f32 %v2868_v3, %v1239_v10 }
 0xe55   :  { %1139 = vrot.lane.b32.xlu1 %v1137_v9, %s3019_s4 }
 0xe56   :  { %1243 = vrot.lane.b32.xlu0 %v1241_v12, %s3019_s4 }
 0xec7   :  { %v1140_v17 = vpop.permute.xlu1 %1139 }
 0xec8   :  { %v3352_v19 = vadd.f32 %v1140_v17, %v1132_v15  ;;  %v1244_v21 = vpop.permute.xlu0 %1243 }
 0xec9   :  { %v3354_v22 = vadd.f32 %v1244_v21, %v1236_v18 }
 0xeca   :  { %2869 = vtanh.f32 %v3352_v19 }
 0xecb   :  { %2871 = vtanh.f32 %v3354_v22  ;;  %v1445_v61 = vrot.slane %v3354_v22, 6 }
 0xed4   :  { %v2870_v23 = vpop.eup %2869 }
 0xed5   :  { %v2872_v59 = vpop.eup %2871  ;;  %1145 = vrot.lane.b32.xlu1 %v2870_v23, %s3018_s21 }
 0xed6   :  { %1249 = vrot.lane.b32.xlu0 %v2872_v59, %s3018_s21 }
 0xf47   :  { %v1146_v24 = vpop.permute.xlu1 %1145 }
 0xf48   :  { %v1148_v26 = vmul.f32 %v2866_v2, %v1146_v24  ;;  %v1250_v28 = vpop.permute.xlu0 %1249 }
 0xf49   :  { %v1252_v29 = vmul.f32 %v2868_v3, %v1250_v28 }
 0xf4a   :  { %1258 = vrot.lane.b32.xlu0 %v1148_v26, %s3018_s21 }
 0xf4b   :  { %1254 = vrot.lane.b32.xlu1 %v1252_v29, %s3019_s4 }
 0xfbc   :  { %v1259_v30 = vpop.permute.xlu0 %1258 }
 0xfbd   :  { %v1255_v31 = vpop.permute.xlu1 %1254 }
 0xfbe   :  { %v1261_v32 = vsel %vm294_vm5, %v1255_v31, %v1259_v30  ;;  %2520 = vmatmul.mubr.msk.f32.vlgmr.msra.gmra.mrb[12].mxu0 %vm294_vm5, %v1255_v31 }
 0xfbf   :  { %2509 = vmatmul.mubr.msk.f32.vlgmr.msra.gmra.mrb[10].mxu1 %vm405_vm6, %v1261_v32  ;;  %2754 = vmatpush3.bf16.msra.mxu0 %v3174_v11 }
 0xfc0   :  { %2755 = vmatprep.subr.bf16.mxu0 %v3015_v27  ;;  %2766 = vmatpush3.bf16.msra.mxu1 %v3132_v46 }
 0xfc1   :  { %2767 = vmatprep.subr.bf16.mxu1 %v3015_v27  ;;  %2538 = vmatprep.mubr.msk.f32.mxu0 %vm3017_vm4, %v3016_v43 }
 0xfc2   :  { %2549 = vmatprep.mubr.msk.f32.mxu1 %vm3017_vm4, %v3016_v43 }
 0xfc3   :  { %2757 = vmatpush3.bf16.msra.mxu0 %v3180_v13 }
 0xfc4   :  { %2758 = vmatprep.subr.bf16.mxu0 %v3015_v27  ;;  %2769 = vmatpush3.bf16.msra.mxu1 %v3137_v50 }
 0xfc5   :  { %2770 = vmatprep.subr.bf16.mxu1 %v3015_v27 }
 0xfc7   :  { %2760 = vmatpush3.bf16.msra.mxu0 %v3190_v16 }
 0xfc8   :  { %2761 = vmatprep.subr.bf16.mxu0 %v3015_v27 }
 0xfcb   :  { %2763 = vmatpush3.bf16.msra.mxu0 %v3201_v20 }
 0xfcc   :  { %2782 = vmatprep.subr.bf16.mxu0 %v3015_v27 }
0x1091   :  { %v1428_v33 = vpop.f32.mrb[12].mxu0 }
0x1092   :  { %v1433_v34 = vrot.slane %v1428_v33, 6  ;;  %v1331_v35 = vpop.f32.mrb[10].mxu1  ;;  %v2521_v36 = vpop.f32.mrb[13].mxu0 }
0x1093   :  { %v1332_v37 = vadd.f32 %v3229_v25, %v1331_v35  ;;  %v2510_v38 = vpop.f32.mrb[11].mxu1 }
0x1094   :  { %v1435_v39 = vadd.f32 %v1433_v34, %v3155_v57 }
0x1095   :  { %v2143_v40 = vmul.f32 -1.442695, %v1332_v37 }
0x1096   :  { %v2146_v41 = vmul.f32 -1.442695, %v1435_v39 }
0x1097   :  { %2873 = vpow2.f32 %v2143_v40 }
0x1098   :  { %2875 = vpow2.f32 %v2146_v41 }
0x10a1   :  { %v2874_v42 = vpop.eup %2873 }
0x10a2   :  { %v2876_v44 = vpop.eup %2875  ;;  %v1338_v45 = vadd.f32 1.0, %v2874_v42 }
0x10a3   :  { %v1439_v47 = vadd.f32 1.0, %v2876_v44 }
0x10a4   :  { %2877 = vrcp.f32 %v1338_v45 }
0x10a5   :  { %2879 = vrcp.f32 %v1439_v47 }
0x10ae   :  { %v2878_v48 = vpop.eup %2877 }
0x10af   :  { %v2880_v49 = vpop.eup %2879  ;;  %v1341_v51 = vmul.f32 2.0, %v2878_v48  ;;  %v1343_v62 = vmul.f32 %v2878_v48, %v3352_v19 }
0x10b0   :  { %v1442_v52 = vmul.f32 2.0, %v2880_v49  ;;  %v1447_v0 = vmul.f32 %v2880_v49, %v1445_v61 }
0x10b1   :  { %v2144_v53 = vadd.f32 -1.0, %v1341_v51 }
0x10b2   :  { %v2147_v54 = vadd.f32 -1.0, %v1442_v52 }
0x10b3   :  { %1345 = vrot.lane.b32.xlu1 %v2144_v53, %s3018_s21 }
0x10b4   :  { %1449 = vrot.lane.b32.xlu0 %v2147_v54, %s3018_s21 }
0x1125   :  { %v1346_v55 = vpop.permute.xlu1 %1345 }
0x1126   :  { %v1348_v56 = vmul.f32 %v2878_v48, %v1346_v55  ;;  %v1450_v58 = vpop.permute.xlu0 %1449 }
0x1127   :  { %v1452_v60 = vmul.f32 %v2880_v49, %v1450_v58 }
0x1128   :  { %1350 = vrot.lane.b32.xlu1 %v1348_v56, %s3019_s4 }
0x1129   :  { %1454 = vrot.lane.b32.xlu0 %v1452_v60, %s3019_s4 }
0x119a   :  { %v1351_v63 = vpop.permute.xlu1 %1350 }
0x119b   :  { %v3389_v1 = vadd.f32 %v1351_v63, %v1343_v62  ;;  %v1455_v2 = vpop.permute.xlu0 %1454 }
0x119c   :  { %v3391_v3 = vadd.f32 %v1455_v2, %v1447_v0 }
0x119d   :  { %2881 = vtanh.f32 %v3389_v1 }
0x119e   :  { %2883 = vtanh.f32 %v3391_v3  ;;  %v1661_v44 = vrot.slane %v3391_v3, 6 }
0x11a7   :  { %v2882_v4 = vpop.eup %2881 }
0x11a8   :  { %v2884_v5 = vpop.eup %2883  ;;  %1356 = vrot.lane.b32.xlu1 %v2882_v4, %s3018_s21 }
0x11a9   :  { %1460 = vrot.lane.b32.xlu0 %v2884_v5, %s3018_s21 }
0x121a   :  { %v1357_v6 = vpop.permute.xlu1 %1356 }
0x121b   :  { %v1359_v7 = vmul.f32 %v2878_v48, %v1357_v6  ;;  %v1461_v8 = vpop.permute.xlu0 %1460 }
0x121c   :  { %v1463_v9 = vmul.f32 %v2880_v49, %v1461_v8 }
0x121d   :  { %v1469_v10 = vrot.slane %v1359_v7, 6 }
0x121e   :  { %1465 = vrot.lane.b32.xlu1 %v1463_v9, %s3019_s4  ;;  %v1573_v12 = vrot.slane %v1463_v9, 2 }
0x121f   :  { %1470 = vrot.lane.b32.xlu0 %v1469_v10, %s3018_s21 }
0x1222   :  { %1574 = vrot.lane.b32.xlu1 %v1573_v12, %s3019_s4 }
0x1290   :  { %v1466_v14 = vpop.permute.xlu1 %1465 }
0x1291   :  { %v1471_v15 = vpop.permute.xlu0 %1470 }
0x1292   :  { %v1473_v17 = vsel %vm294_vm5, %v1466_v14, %v1471_v15 }
0x1293   :  { %v1475_v18 = vrot.slane %v1473_v17, 2 }
0x1294   :  { %v1575_v19 = vpop.permute.xlu1 %1574 }
0x1295   :  { %2539 = vmatmul.mubr.msk.f32.vlgmr.msra.gmra.mrb[14].mxu0 %vm405_vm6, %v1475_v18  ;;  %2550 = vmatmul.mubr.msk.f32.vlgmr.msra.gmra.mrb[12].mxu1 %vm294_vm5, %v1575_v19 }
0x1296   :  { %2772 = vmatpush3.bf16.msra.mxu1 %v3174_v11  ;;  %2784 = vmatpush3.bf16.msra.mxu0 %v3132_v46 }
0x1297   :  { %2773 = vmatprep.subr.bf16.mxu1 %v3015_v27  ;;  %2785 = vmatprep.subr.bf16.mxu0 %v3015_v27 }
0x1298   :  { %2568 = vmatprep.mubr.msk.f32.mxu1 %vm3017_vm4, %v3016_v43  ;;  %2579 = vmatprep.mubr.msk.f32.mxu0 %vm3017_vm4, %v3016_v43 }
0x129a   :  { %2775 = vmatpush3.bf16.msra.mxu1 %v3180_v13  ;;  %2787 = vmatpush3.bf16.msra.mxu0 %v3137_v50 }
0x129b   :  { %2776 = vmatprep.subr.bf16.mxu1 %v3015_v27  ;;  %2788 = vmatprep.subr.bf16.mxu0 %v3015_v27 }
0x129e   :  { %2778 = vmatpush3.bf16.msra.mxu1 %v3190_v16 }
0x129f   :  { %2779 = vmatprep.subr.bf16.mxu1 %v3015_v27 }
0x12a2   :  { %2781 = vmatpush3.bf16.msra.mxu1 %v3201_v20 }
0x12a3   :  { %2800 = vmatprep.subr.bf16.mxu1 %v3015_v27 }
0x1368   :  { %v1544_v46 = vpop.f32.mrb[14].mxu0  ;;  %v1644_v21 = vpop.f32.mrb[12].mxu1 }
0x1369   :  { %v1545_v22 = vadd.f32 %v3229_v25, %v1544_v46  ;;  %v1649_v23 = vrot.slane %v1644_v21, 4  ;;  %v2540_v59 = vpop.f32.mrb[15].mxu0  ;;  %v2551_v24 = vpop.f32.mrb[13].mxu1 }
0x136b   :  { %v2149_v50 = vmul.f32 -1.442695, %v1545_v22  ;;  %v1651_v26 = vadd.f32 %v1649_v23, %v3155_v57 }
0x136d   :  { %2885 = vpow2.f32 %v2149_v50  ;;  %v2152_v28 = vmul.f32 -1.442695, %v1651_v26 }
0x136f   :  { %2887 = vpow2.f32 %v2152_v28 }
0x1377   :  { %v2886_v29 = vpop.eup %2885 }
0x1378   :  { %v1551_v30 = vadd.f32 1.0, %v2886_v29 }
0x1379   :  { %v2888_v31 = vpop.eup %2887 }
0x137a   :  { %2889 = vrcp.f32 %v1551_v30  ;;  %v1655_v32 = vadd.f32 1.0, %v2888_v31 }
0x137c   :  { %2891 = vrcp.f32 %v1655_v32 }
0x1384   :  { %v2890_v33 = vpop.eup %2889 }
0x1385   :  { %v1554_v34 = vmul.f32 2.0, %v2890_v33  ;;  %v1556_v45 = vmul.f32 %v2890_v33, %v3389_v1 }
0x1386   :  { %v2892_v35 = vpop.eup %2891 }
0x1387   :  { %v2150_v36 = vadd.f32 -1.0, %v1554_v34  ;;  %v1658_v37 = vmul.f32 2.0, %v2892_v35  ;;  %v1663_v49 = vmul.f32 %v2892_v35, %v1661_v44 }
0x1389   :  { %1558 = vrot.lane.b32.xlu0 %v2150_v36, %s3018_s21  ;;  %v2153_v38 = vadd.f32 -1.0, %v1658_v37 }
0x138b   :  { %1665 = vrot.lane.b32.xlu1 %v2153_v38, %s3018_s21 }
0x13fb   :  { %v1559_v39 = vpop.permute.xlu0 %1558 }
0x13fc   :  { %v1561_v40 = vmul.f32 %v2890_v33, %v1559_v39 }
0x13fd   :  { %v1666_v41 = vpop.permute.xlu1 %1665 }
0x13fe   :  { %v1668_v42 = vmul.f32 %v2892_v35, %v1666_v41  ;;  %1563 = vrot.lane.b32.xlu0 %v1561_v40, %s3019_s4 }
0x1400   :  { %1670 = vrot.lane.b32.xlu1 %v1668_v42, %s3019_s4 }
0x1470   :  { %v1564_v47 = vpop.permute.xlu0 %1563 }
0x1471   :  { %v3427_v48 = vadd.f32 %v1564_v47, %v1556_v45 }
0x1472   :  { %v1671_v51 = vpop.permute.xlu1 %1670 }
0x1473   :  { %2893 = vtanh.f32 %v3427_v48  ;;  %v3430_v52 = vadd.f32 %v1671_v51, %v1663_v49 }
0x1475   :  { %2895 = vtanh.f32 %v3430_v52  ;;  %v1877_v24 = vrot.slane %v3430_v52, 6 }
0x147d   :  { %v2894_v53 = vpop.eup %2893 }
0x147e   :  { %1569 = vrot.lane.b32.xlu0 %v2894_v53, %s3018_s21 }
0x147f   :  { %v2896_v54 = vpop.eup %2895 }
0x1480   :  { %1676 = vrot.lane.b32.xlu1 %v2896_v54, %s3018_s21 }
0x14f0   :  { %v1570_v55 = vpop.permute.xlu0 %1569 }
0x14f1   :  { %v1572_v56 = vmul.f32 %v2890_v33, %v1570_v55 }
0x14f2   :  { %v1677_v58 = vpop.permute.xlu1 %1676 }
0x14f3   :  { %v1685_v60 = vrot.slane %v1572_v56, 4  ;;  %v1679_v61 = vmul.f32 %v2892_v35, %v1677_v58 }
0x14f5   :  { %1681 = vrot.lane.b32.xlu0 %v1679_v61, %s3019_s4  ;;  %1686 = vrot.lane.b32.xlu1 %v1685_v60, %s3018_s21  ;;  %v1789_v62 = vrot.slane %v1679_v61, 4  ;;  %v2006_v61 = vld [vmem:[%s3507_s7 + $0x8] sm:$0xff] }
0x14f9   :  { %1790 = vrot.lane.b32.xlu0 %v1789_v62, %s3019_s4  ;;  %v2007_v62 = vld [vmem:[%s3507_s7 + $0x10] sm:$0xff] }
0x1567   :  { %v1687_v63 = vpop.permute.xlu1 %1686  ;;  %v1682_v0 = vpop.permute.xlu0 %1681 }
0x1568   :  { %v1689_v1 = vsel %vm294_vm5, %v1682_v0, %v1687_v63  ;;  %v2008_v0 = vld [vmem:[%s3507_s7 + $0x18] sm:$0xff] }
0x1569   :  { %v1691_v2 = vrot.slane %v1689_v1, 4  ;;  %v2804_v1 = vpack.c.bf16 %v2008_v0, %v2007_v62 }
0x156b   :  { %2569 = vmatmul.mubr.msk.f32.vlgmr.msra.gmra.mrb[14].mxu1 %vm405_vm6, %v1691_v2  ;;  %v1791_v3 = vpop.permute.xlu0 %1790 }
0x156c   :  { %2580 = vmatmul.mubr.msk.f32.vlgmr.msra.gmra.mrb[16].mxu0 %vm294_vm5, %v1791_v3  ;;  %2609 = vmatprep.mubr.msk.f32.mxu1 %vm3017_vm4, %v3016_v43 }
0x156d   :  { %2790 = vmatpush3.bf16.msra.mxu0 %v3174_v11  ;;  %2598 = vmatprep.mubr.msk.f32.mxu0 %vm3017_vm4, %v3016_v43 }
0x156e   :  { %2791 = vmatprep.subr.bf16.mxu0 %v3015_v27 }
0x1571   :  { %2793 = vmatpush3.bf16.msra.mxu0 %v3180_v13 }
0x1572   :  { %2794 = vmatprep.subr.bf16.mxu0 %v3015_v27 }
0x1575   :  { %2796 = vmatpush3.bf16.msra.mxu0 %v3190_v16 }
0x1576   :  { %2797 = vmatprep.subr.bf16.mxu0 %v3015_v27 }
0x1579   :  { %2799 = vmatpush3.bf16.msra.mxu0 %v3201_v20 }
0x163e   :  { %v1760_v4 = vpop.f32.mrb[14].mxu1 }
0x163f   :  { %v1761_v5 = vadd.f32 %v3229_v25, %v1760_v4  ;;  %v2570_v6 = vpop.f32.mrb[15].mxu1  ;;  %v1860_v11 = vpop.f32.mrb[16].mxu0 }
0x1640   :  { %v1865_v7 = vrot.slane %v1860_v11, 2  ;;  %v2581_v8 = vpop.f32.mrb[17].mxu0  ;;  %v2163_v6 = vld [vmem:[%s3508_s8] ss:$0 sm:$0xff] }
0x1641   :  { %v2155_v43 = vmul.f32 -1.442695, %v1761_v5 }
0x1642   :  { %v1867_v9 = vadd.f32 %v1865_v7, %v3155_v57 }
0x1643   :  { %2897 = vpow2.f32 %v2155_v43 }
0x1644   :  { %v2158_v13 = vmul.f32 -1.442695, %v1867_v9 }
0x1646   :  { %2899 = vpow2.f32 %v2158_v13 }
0x164d   :  { %v2898_v10 = vpop.eup %2897 }
0x164e   :  { %v1767_v12 = vadd.f32 1.0, %v2898_v10 }
0x1650   :  { %v2900_v16 = vpop.eup %2899  ;;  %2901 = vrcp.f32 %v1767_v12 }
0x1651   :  { %v1871_v14 = vadd.f32 1.0, %v2900_v16 }
0x1653   :  { %2903 = vrcp.f32 %v1871_v14 }
0x165a   :  { %v2902_v20 = vpop.eup %2901 }
0x165b   :  { %v1770_v15 = vmul.f32 2.0, %v2902_v20  ;;  %v1772_v59 = vmul.f32 %v2902_v20, %v3427_v48 }
0x165d   :  { %v2904_v17 = vpop.eup %2903  ;;  %v2156_v18 = vadd.f32 -1.0, %v1770_v15 }
0x165e   :  { %v1874_v19 = vmul.f32 2.0, %v2904_v17  ;;  %v1879_v28 = vmul.f32 %v2904_v17, %v1877_v24 }
0x165f   :  { %1774 = vrot.lane.b32.xlu1 %v2156_v18, %s3018_s21 }
0x1660   :  { %v2159_v46 = vadd.f32 -1.0, %v1874_v19 }
0x1662   :  { %1881 = vrot.lane.b32.xlu0 %v2159_v46, %s3018_s21 }
0x16d1   :  { %v1775_v57 = vpop.permute.xlu1 %1774 }
0x16d2   :  { %v1777_v21 = vmul.f32 %v2902_v20, %v1775_v57 }
0x16d4   :  { %1779 = vrot.lane.b32.xlu1 %v1777_v21, %s3019_s4  ;;  %v1882_v22 = vpop.permute.xlu0 %1881 }
0x16d5   :  { %v1884_v23 = vmul.f32 %v2904_v17, %v1882_v22 }
0x16d7   :  { %1886 = vrot.lane.b32.xlu0 %v1884_v23, %s3019_s4 }
0x1746   :  { %v1780_v50 = vpop.permute.xlu1 %1779 }
0x1747   :  { %v1782_v26 = vadd.f32 %v1780_v50, %v1772_v59 }
0x1749   :  { %2905 = vtanh.f32 %v1782_v26  ;;  %v1887_v29 = vpop.permute.xlu0 %1886 }
0x174a   :  { %v1889_v30 = vadd.f32 %v1887_v29, %v1879_v28 }
0x174c   :  { %2907 = vtanh.f32 %v1889_v30 }
0x1753   :  { %v2906_v31 = vpop.eup %2905 }
0x1754   :  { %1785 = vrot.lane.b32.xlu1 %v2906_v31, %s3018_s21 }
0x1756   :  { %v2908_v32 = vpop.eup %2907 }
0x1757   :  { %1892 = vrot.lane.b32.xlu0 %v2908_v32, %s3018_s21 }
0x17c6   :  { %v1786_v33 = vpop.permute.xlu1 %1785 }
0x17c7   :  { %v1788_v34 = vmul.f32 %v2902_v20, %v1786_v33 }
0x17c9   :  { %v1901_v35 = vrot.slane %v1788_v34, 2  ;;  %v1893_v36 = vpop.permute.xlu0 %1892 }
0x17ca   :  { %v1895_v37 = vmul.f32 %v2904_v17, %v1893_v36 }
0x17cb   :  { %1902 = vrot.lane.b32.xlu0 %v1901_v35, %s3018_s21 }
0x17cc   :  { %1897 = vrot.lane.b32.xlu1 %v1895_v37, %s3019_s4 }
0x183d   :  { %v1903_v38 = vpop.permute.xlu0 %1902 }
0x183e   :  { %v1898_v39 = vpop.permute.xlu1 %1897 }
0x183f   :  { %v1905_v40 = vsel %vm294_vm5, %v1898_v39, %v1903_v38 }
0x1840   :  { %v1907_v41 = vrot.slane %v1905_v40, 6 }
0x1842   :  { %2599 = vmatmul.mubr.msk.f32.vlgmr.msra.gmra.mrb[18].mxu0 %vm405_vm6, %v1907_v41 }
0x1915   :  { %v1976_v42 = vpop.f32.mrb[18].mxu0 }
0x1916   :  { %v1977_v44 = vadd.f32 %v3229_v25, %v1976_v42  ;;  %v2600_v45 = vpop.f32.mrb[19].mxu0  ;;  %v2005_v25 = vld [vmem:[%s3507_s7] sm:$0xff]  ;;  %s3020_s7 = smov [#allocation8]  }
0x1917   :  { %v2801_v63 = vpack.c.bf16 %v2006_v61, %v2005_v25  ;;  %s2099_s11 = sshll.u32 %s3020_s7, 4  ;;  %s2100_s11 = int_to_ptr.vmem [resolvable:$true] %s2099_s11 }
0x1918   :  { %v2161_v47 = vmul.f32 -1.442695, %v1977_v44  ;;  %p2986_p11 = scmp.lt.s32.totalorder %s2100_s11, %s2100_s11 }
0x1919   :  { %2802 = vmatpush3.bf16.msra.mxu1 %v2801_v63 }
0x191a   :  { %2909 = vpow2.f32 %v2161_v47  ;;  %2803 = vmatprep.subr.bf16.mxu1 %v3015_v27 }
0x191d   :  { %2805 = vmatpush3.bf16.msra.mxu1 %v2804_v1 }
0x1924   :  { %v2910_v48 = vpop.eup %2909 }
0x1925   :  { %v1983_v49 = vadd.f32 1.0, %v2910_v48 }
0x1927   :  { %2911 = vrcp.f32 %v1983_v49 }
0x1931   :  { %v2912_v51 = vpop.eup %2911 }
0x1932   :  { %v1986_v52 = vmul.f32 2.0, %v2912_v51  ;;  %v1988_v56 = vmul.f32 %v2912_v51, %v1782_v26 }
0x1934   :  { %v2162_v53 = vadd.f32 -1.0, %v1986_v52 }
0x1936   :  { %1990 = vrot.lane.b32.xlu1 %v2162_v53, %s3018_s21 }
0x19a8   :  { %v1991_v54 = vpop.permute.xlu1 %1990 }
0x19a9   :  { %v1993_v55 = vmul.f32 %v2912_v51, %v1991_v54 }
0x19ab   :  { %1995 = vrot.lane.b32.xlu0 %v1993_v55, %s3019_s4 }
0x1a1d   :  { %v1996_v58 = vpop.permute.xlu0 %1995 }
0x1a1e   :  { %v1998_v60 = vadd.f32 %v1996_v58, %v1988_v56 }
0x1a20   :  { %2913 = vtanh.f32 %v1998_v60 }
0x1a2a   :  { %v2914_v2 = vpop.eup %2913 }
0x1a2b   :  { %2001 = vrot.lane.b32.xlu1 %v2914_v2, %s3018_s21  ;;  %s2981_s21 = scalar_lea.vmem %s2100_s11, 32 }
0x1a2c   :  { %p2982_p10 = scmp.ne.s32.totalorder %s2100_s11, %s2981_s21  ;;  %p2987_p12 = scmp.lt.s32.totalorder %s2981_s21, %s2981_s21 }
0x1a2e   :  { %p2988_p13 = por %p2987_p12, %p2986_p11 }
0x1a30   :  { %p2989_p0 = pnand %p2988_p13, %p2982_p10 }
0x1a9d   :  { %v2002_v3 = vpop.permute.xlu1 %2001 }
0x1a9e   :  { %v2004_v4 = vmul.f32 %v2912_v51, %v2002_v3 }
0x1aa0   :  { %2017 = vrot.lane.b32.xlu0 %v2004_v4, %s3019_s4 }
0x1b12   :  { %v2018_v5 = vpop.permute.xlu0 %2017 }
0x1b13   :  { %2610 = vmatmul.mubr.msk.f32.vlgmr.msra.gmra.mrb[16].mxu1 %vm294_vm5, %v2018_v5 }
0x1be6   :  { %v2087_v11 = vpop.f32.mrb[16].mxu1 }
0x1be7   :  { %v2088_v27 = vadd.f32 %v2163_v6, %v2087_v11  ;;  %v2611_v7 = vpop.f32.mrb[17].mxu1 }
0x1be9   :  { %2092 = vst.msk [vmem:[#allocation8] sm:$0x3] %vm2091_vm7, %v2088_v27 }
0x1bea   :  { %2992 = shalt.err (!%p2989_p0)
}
0x1beb   :  { %s2993_s2 = scalar_lea.hbm %s3509_s9, 32 }
0x1bec   :  { %p2994_p1 = scmp.ne.s32.totalorder %s3509_s9, %s2993_s2  ;;  %p2997_p2 = scmp.lt.u32.totalorder %s2993_s2, %s3509_s9 }
0x1bee   :  { %p2999_p3 = pnand %p2997_p2, %p2994_p1 }
0x1bf0   :  { %3002 = shalt.err (!%p2999_p3)
}
0x1bf1   :  { %2102 = dma.vmem_to_hbm [thread:$0]  %s2100_s11, 32, %s3509_s9, [#allocation4]  }
0x1bf2   :  { %3007 = dma.done.wait [#allocation4], 32  }
0x1bf3   :  { %3008 = vsyncadd [#allocation4], 4294967264 }
0x1bf4   :  { %2106 = vsyncpa [#allocation3], 1 }
0x1bf5   :  { %2107 = vsyncpa [#allocation6], 1 }
0x1bf6   :  { %2108 = vsyncpa [#allocation4], 1 }

</bundles_post_ra>
